<compile_context>
chip_gen: v7x
topology: tpu7x:2x2x1
jax: 0.10.0
libtpu: 0.0.40
codegen_flags: <defaults>
</compile_context>

<pallas_src>
import jax
import jax.numpy as jnp
from jax import lax
from jax.experimental import pallas as pl
from jax.experimental.pallas import tpu as pltpu


def _round_up(x, m):
    return ((x + m - 1) // m) * m


def _tpu_defaults():
    """Generation-aware row tile / VMEM limit (safe fallback: v7x-class)."""
    tm_target, vmem_limit = 1024, 48 * 1024 * 1024          # fits 64 MiB VMEM
    try:
        cap = pltpu.get_tpu_info().vmem_capacity_bytes
        if cap is not None and cap >= 100 * 1024 * 1024:    # v5e / v6e: 128 MiB
            tm_target, vmem_limit = 2048, 96 * 1024 * 1024
    except Exception:
        pass
    return tm_target, vmem_limit


_TM_TARGET, _VMEM_LIMIT = _tpu_defaults()
_TK_TARGET = 512        # contraction tile over the node axis


# --------------------------------------------------------------------------- #
# Kernel 1: feature transform  XW = X @ W
#   W is fully resident (no K grid axis, no accumulator scratch); X holds the
#   row-stacked [seq1_pad; seq2_pad] so this runs once per forward.
# --------------------------------------------------------------------------- #
def _xw_kernel(x_ref, w_ref, o_ref):
    o_ref[...] = jnp.dot(x_ref[...], w_ref[...],
                         preferred_element_type=jnp.float32).astype(o_ref.dtype)


def feature_transform(x_p, w_p, tm):
    M, Fp = x_p.shape
    Hp = w_p.shape[1]
    assert M % tm == 0
    return pl.pallas_call(
        _xw_kernel,
        out_shape=jax.ShapeDtypeStruct((M, Hp), jnp.bfloat16),
        grid_spec=pltpu.PrefetchScalarGridSpec(
            num_scalar_prefetch=0,
            grid=(M // tm,),
            in_specs=[
                pl.BlockSpec((tm, Fp), lambda i: (i, 0)),
                pl.BlockSpec((Fp, Hp), lambda i: (0, 0)),   # W resident
            ],
            out_specs=pl.BlockSpec((tm, Hp), lambda i: (i, 0)),
        ),
        compiler_params=pltpu.CompilerParams(
            dimension_semantics=("parallel",),
            vmem_limit_bytes=_VMEM_LIMIT,
        ),
    )(x_p, w_p)


# --------------------------------------------------------------------------- #
# Kernel 2: fused graph aggregation for BOTH encoder passes + bias + PReLU:
#   H1 = PReLU(adj @ XW1 + b),  H2 = PReLU(adj @ XW2 + b)
#   adj is streamed once; accumulation happens directly in the resident f32
#   output blocks (block index (i, 0) is invariant over the k axis).
# --------------------------------------------------------------------------- #
def _aggregate_prelu_pair_kernel(adj_ref, xw1_ref, xw2_ref, b_ref, alpha_ref,
                                 o1_ref, o2_ref):
    k = pl.program_id(1)

    @pl.when(k == 0)
    def _():
        o1_ref[...] = jnp.zeros_like(o1_ref)
        o2_ref[...] = jnp.zeros_like(o2_ref)

    adj_blk = adj_ref[...]
    o1_ref[...] += jnp.dot(adj_blk, xw1_ref[...],
                           preferred_element_type=jnp.float32)
    o2_ref[...] += jnp.dot(adj_blk, xw2_ref[...],
                           preferred_element_type=jnp.float32)

    @pl.when(k == pl.num_programs(1) - 1)
    def _():
        alpha = alpha_ref[0]                    # PReLU slope (scalar in SMEM)
        h1 = o1_ref[...] + b_ref[...]
        h2 = o2_ref[...] + b_ref[...]
        o1_ref[...] = jnp.where(h1 >= 0.0, h1, alpha * h1)
        o2_ref[...] = jnp.where(h2 >= 0.0, h2, alpha * h2)


def aggregate_prelu_pair(adj_p, xw_stack, b_p, alpha, tm, tk):
    n_pad_m, n_pad_k = adj_p.shape
    Hp = xw_stack.shape[1]
    assert n_pad_m % tm == 0 and n_pad_k % tk == 0
    n_blk_k = n_pad_k // tk
    return pl.pallas_call(
        _aggregate_prelu_pair_kernel,
        out_shape=(jax.ShapeDtypeStruct((n_pad_m, Hp), jnp.float32),
                   jax.ShapeDtypeStruct((n_pad_m, Hp), jnp.float32)),
        grid_spec=pltpu.PrefetchScalarGridSpec(
            num_scalar_prefetch=0,
            grid=(n_pad_m // tm, n_blk_k),
            in_specs=[
                pl.BlockSpec((tm, tk), lambda i, k: (i, k)),
                pl.BlockSpec((tk, Hp), lambda i, k: (k, 0)),                 # XW(seq1)
                pl.BlockSpec((tk, Hp), lambda i, k, nbk=n_blk_k: (k + nbk, 0)),  # XW(seq2)
                pl.BlockSpec((1, Hp), lambda i, k: (0, 0)),
                pl.BlockSpec(memory_space=pltpu.MemorySpace.SMEM),
            ],
            out_specs=[
                pl.BlockSpec((tm, Hp), lambda i, k: (i, 0)),
                pl.BlockSpec((tm, Hp), lambda i, k: (i, 0)),
            ],
        ),
        compiler_params=pltpu.CompilerParams(
            dimension_semantics=("parallel", "arbitrary"),
            vmem_limit_bytes=_VMEM_LIMIT,
        ),
    )(adj_p, xw_stack, xw_stack, b_p, jnp.asarray(alpha, jnp.float32).reshape(1))


def gcn_encoder_pair(x1, x2, adj_norm, w_gcn, b_gcn, alpha):
    """Both DGI encoder passes: PReLU(adj @ (x_i @ W) + b) for x1 and x2.

    bf16 MXU operands with f32 accumulation; shapes are zero-padded so padded
    rows/cols contribute exactly zero.  Hidden dim is lane-padded to >=128.
    """
    N, F = x1.shape
    H = w_gcn.shape[1]
    Hp = max(128, _round_up(H, 128))
    Fp = max(128, _round_up(F, 128))

    # Contraction axis (adjacency columns == XW rows): pad to one 128-block for
    # tiny graphs, otherwise to a multiple of 512 (waste < 512 cols).
    if N <= _TK_TARGET:
        tk_n = _round_up(N, 128)
        n_pad_k = tk_n
    else:
        tk_n = _TK_TARGET
        n_pad_k = _round_up(N, tk_n)

    # Row axis: near-even multiple-of-8 tiles no larger than _TM_TARGET
    # (avoids the lcm-padding blow-up; waste < 8 rows per block).
    nb_m = pl.cdiv(N, _TM_TARGET)
    tm_r = _round_up(pl.cdiv(N, nb_m), 8)
    n_pad_m = nb_m * tm_r

    # bf16 operand casts + zero padding (adjacency cast/padded once per forward).
    x_p = jnp.zeros((2 * n_pad_k, Fp), jnp.bfloat16)
    x_p = x_p.at[:N, :F].set(x1.astype(jnp.bfloat16))
    x_p = x_p.at[n_pad_k:n_pad_k + N, :F].set(x2.astype(jnp.bfloat16))
    w_p = jnp.zeros((Fp, Hp), jnp.bfloat16).at[:F, :H].set(
        w_gcn.astype(jnp.bfloat16))
    adj_p = jnp.zeros((n_pad_m, n_pad_k), jnp.bfloat16).at[:N, :N].set(
        adj_norm.astype(jnp.bfloat16))
    b_p = jnp.zeros((1, Hp), jnp.float32).at[0, :H].set(
        b_gcn.astype(jnp.float32))

    tm_1 = min(512, n_pad_k)                       # divides 2 * n_pad_k
    xw_stack = feature_transform(x_p, w_p, tm=tm_1)        # (2*n_pad_k, Hp) bf16

    h1, h2 = aggregate_prelu_pair(adj_p, xw_stack, b_p, alpha,
                                  tm=tm_r, tk=tk_n)        # (n_pad_m, Hp) f32
    # Keep the lane-padded hidden dim (padded columns are exactly zero).
    return h1[:N], h2[:N]


# --------------------------------------------------------------------------- #
# Kernel 3: fused AvgReadout + Sigmoid + Bilinear Discriminator
#   c           = sigmoid(mean(h_pl, axis=0))
#   u_o         = W_o @ c                       (computed once, as c @ W_o^T)
#   sc1[o, n]   = h_pl[n] . u_o + b_o           (bf16 operands, f32 acc)
#   sc2[o, n]   = h_mi[n] . u_o + b_o
# Two lane-dense (2, S) outputs; the wrapper transposes/concats to (2S, 2).
# --------------------------------------------------------------------------- #
def _dgi_disc_kernel(h_pl_ref, h_mi_ref, w0t_ref, w1t_ref, b_ref,
                     o1_ref, o2_ref):
    h_pl = h_pl_ref[...]                                        # (S, Hp) f32
    h_mi = h_mi_ref[...]

    # AvgReadout over sampled positive nodes + sigmoid -> summary c, shape (1, Hp)
    c = jax.nn.sigmoid(jnp.mean(h_pl, axis=0, keepdims=True))

    # u_o = W_o @ c, computed as c @ W_o^T (weights pre-transposed in wrapper).
    u0 = jnp.dot(c, w0t_ref[...], preferred_element_type=jnp.float32)   # (1, Hp)
    u1 = jnp.dot(c, w1t_ref[...], preferred_element_type=jnp.float32)   # (1, Hp)
    u = jnp.concatenate([u0, u1], axis=0).astype(jnp.bfloat16)          # (2, Hp)

    b = b_ref[...]                                                       # (2, 1)
    dims = (((1,), (1,)), ((), ()))
    o1_ref[...] = lax.dot_general(u, h_pl.astype(jnp.bfloat16), dims,
                                  preferred_element_type=jnp.float32) + b
    o2_ref[...] = lax.dot_general(u, h_mi.astype(jnp.bfloat16), dims,
                                  preferred_element_type=jnp.float32) + b


def dgi_discriminator(h_pl, h_mi, w_disc, b_disc):
    S, Hp = h_pl.shape                 # hidden already lane-padded by encoder
    H = w_disc.shape[1]
    w_p = jnp.zeros((2, Hp, Hp), jnp.float32).at[:, :H, :H].set(
        w_disc.astype(jnp.float32))
    w0t, w1t = w_p[0].T, w_p[1].T      # wrapper-side transpose, done once

    out1, out2 = pl.pallas_call(
        _dgi_disc_kernel,
        out_shape=(jax.ShapeDtypeStruct((2, S), jnp.float32),
                   jax.ShapeDtypeStruct((2, S), jnp.float32)),
        grid_spec=pltpu.PrefetchScalarGridSpec(
            num_scalar_prefetch=0,
            grid=(1,),
            in_specs=[
                pl.BlockSpec((S, Hp), lambda i: (0, 0)),
                pl.BlockSpec((S, Hp), lambda i: (0, 0)),
                pl.BlockSpec((Hp, Hp), lambda i: (0, 0)),
                pl.BlockSpec((Hp, Hp), lambda i: (0, 0)),
                pl.BlockSpec((2, 1), lambda i: (0, 0)),
            ],
            out_specs=[
                pl.BlockSpec((2, S), lambda i: (0, 0)),
                pl.BlockSpec((2, S), lambda i: (0, 0)),
            ],
        ),
        compiler_params=pltpu.CompilerParams(
            dimension_semantics=("arbitrary",),
            vmem_limit_bytes=_VMEM_LIMIT,
        ),
    )(h_pl, h_mi, w0t, w1t, b_disc.reshape(2, 1).astype(jnp.float32))

    # (2*S, 2): positive-sample scores first, negative-sample scores second.
    return jnp.concatenate([out1.T, out2.T], axis=0)


# --------------------------------------------------------------------------- #
# Forward pass (DGISample.forward without the per-call numpy index draw)
# --------------------------------------------------------------------------- #
@jax.jit
def dgi_forward(features, shuf_fts, adj_norm, w_gcn, b_gcn, alpha,
                w_disc, b_disc, idx, test_idx):
    # Single pass over the adjacency produces both encoder outputs.
    h1_full, h2_full = gcn_encoder_pair(features, shuf_fts, adj_norm,
                                        w_gcn, b_gcn, alpha)

    # TODO(synk): fuse these row gathers into the discriminator kernel via
    # scalar-prefetched idx + pl.Element(1) row blocks; kept as XLA gathers.
    h_1, h_2 = h1_full[idx], h2_full[idx]
    h_3, h_4 = h1_full[test_idx], h2_full[test_idx]

    logits = dgi_discriminator(h_1, h_2, w_disc, b_disc)        # ret  : (2*S, 2)
    test_logits = dgi_discriminator(h_3, h_4, w_disc, b_disc)   # ret1 : (2*T, 2)
    return logits, test_logits


# --------------------------------------------------------------------------- #
# Pure-JAX references (correctness check only)
# --------------------------------------------------------------------------- #
def _gcn_ref(x, adj, w, b, alpha, cast_dtype=None):
    if cast_dtype is not None:   # emulate the kernel's bf16 operand casts
        x = x.astype(cast_dtype).astype(jnp.float32)
        w = w.astype(cast_dtype).astype(jnp.float32)
        adj = adj.astype(cast_dtype).astype(jnp.float32)
    xw = jnp.dot(x, w, precision="highest")
    if cast_dtype is not None:   # XW intermediate is stored in bf16 by the kernel
        xw = xw.astype(cast_dtype).astype(jnp.float32)
    h = jnp.dot(adj, xw, precision="highest") + b
    return jnp.where(h >= 0.0, h, alpha * h)


def _disc_ref(h_pl, h_mi, w_disc, b_disc, cast_dtype=None):
    c = jax.nn.sigmoid(jnp.mean(h_pl, axis=0))
    u = jnp.einsum("opq,q->op", w_disc, c, precision="highest")        # (2, H)
    if cast_dtype is not None:   # kernel casts score-matmul operands to bf16
        u = u.astype(cast_dtype).astype(jnp.float32)
        h_pl = h_pl.astype(cast_dtype).astype(jnp.float32)
        h_mi = h_mi.astype(cast_dtype).astype(jnp.float32)
    sc1 = jnp.dot(h_pl, u.T, precision="highest") + b_disc
    sc2 = jnp.dot(h_mi, u.T, precision="highest") + b_disc
    return jnp.concatenate([sc1, sc2], axis=0)


# --------------------------------------------------------------------------- #
if __name__ == "__main__":
    key = jax.random.PRNGKey(0)
    N, F_IN, NHID = 64, 32, 32        # num_nodes, in-features, nhid
    S, T = 16, 8                      # sample_size / test size (scaled from 2000/500)

    (k_adj, k_x, k_perm, k_w, k_b, k_wd, k_bd, k_idx) = jax.random.split(key, 8)

    # Symmetric normalized adjacency with self-loops (processed_data.adj_norm).
    a = (jax.random.uniform(k_adj, (N, N)) < 0.1).astype(jnp.float32)
    a = jnp.maximum(a, a.T) + jnp.eye(N, dtype=jnp.float32)
    dinv = 1.0 / jnp.sqrt(jnp.sum(a, axis=1))
    adj_norm = a * dinv[:, None] * dinv[None, :]

    features = jax.random.normal(k_x, (N, F_IN), dtype=jnp.float32)        # seq1
    shuf_fts = features[jax.random.permutation(k_perm, N)]                 # seq2

    # GCN encoder parameters.
    lim = float(jnp.sqrt(6.0 / (F_IN + NHID)))
    w_gcn = jax.random.uniform(k_w, (F_IN, NHID), minval=-lim, maxval=lim,
                               dtype=jnp.float32)
    b_gcn = jax.random.uniform(k_b, (NHID,), minval=-0.1, maxval=0.1,
                               dtype=jnp.float32)
    alpha = jnp.float32(0.25)                                              # PReLU slope

    # Discriminator = nn.Bilinear(nhid, nhid, 2).
    bound = float(1.0 / jnp.sqrt(jnp.float32(NHID)))
    w_disc = jax.random.uniform(k_wd, (2, NHID, NHID), minval=-bound,
                                maxval=bound, dtype=jnp.float32)
    b_disc = jax.random.uniform(k_bd, (2,), minval=-bound, maxval=bound,
                                dtype=jnp.float32)

    # TODO(synk): the original forward draws idx / test_idx with np.random each
    # call; here we use a fixed deterministic disjoint split for reproducibility.
    perm = jax.random.permutation(k_idx, N)
    idx, test_idx = perm[:S], perm[S:S + T]

    # ------------------------- forward pass ------------------------- #
    logits, test_logits = dgi_forward(features, shuf_fts, adj_norm,
                                      w_gcn, b_gcn, alpha, w_disc, b_disc,
                                      idx, test_idx)
    jax.block_until_ready((logits, test_logits))

    # ------------------------- reference checks ----------------------- #
    # (a) tight check: reference with the same bf16 operand casts as the kernels
    h1_q = _gcn_ref(features, adj_norm, w_gcn, b_gcn, alpha, cast_dtype=jnp.bfloat16)
    h2_q = _gcn_ref(shuf_fts, adj_norm, w_gcn, b_gcn, alpha, cast_dtype=jnp.bfloat16)
    ref_logits_q = _disc_ref(h1_q[idx], h2_q[idx], w_disc, b_disc,
                             cast_dtype=jnp.bfloat16)
    ref_test_q = _disc_ref(h1_q[test_idx], h2_q[test_idx], w_disc, b_disc,
                           cast_dtype=jnp.bfloat16)

    assert logits.shape == (2 * S, 2) and test_logits.shape == (2 * T, 2)
    assert bool(jnp.allclose(logits, ref_logits_q, rtol=2e-3, atol=2e-3))
    assert bool(jnp.allclose(test_logits, ref_test_q, rtol=2e-3, atol=2e-3))

    # (b) sanity check vs. full-f32 module semantics (bf16 operand error budget)
    h1_f = _gcn_ref(features, adj_norm, w_gcn, b_gcn, alpha)
    h2_f = _gcn_ref(shuf_fts, adj_norm, w_gcn, b_gcn, alpha)
    ref_logits_f = _disc_ref(h1_f[idx], h2_f[idx], w_disc, b_disc)
    ref_test_f = _disc_ref(h1_f[test_idx], h2_f[test_idx], w_disc, b_disc)
    assert bool(jnp.allclose(logits, ref_logits_f, rtol=1e-1, atol=1e-1))
    assert bool(jnp.allclose(test_logits, ref_test_f, rtol=1e-1, atol=1e-1))

    print("KERNEL_OK")
</pallas_src>

<mosaic_0001>
module attributes {stable_mosaic.version = 11 : i64} {
  func.func @_xw_kernel(%arg0: i32, %arg1: memref<128x128xbf16, #tpu.memory_space<vmem>>, %arg2: memref<128x128xbf16, #tpu.memory_space<vmem>>, %arg3: memref<128x128xbf16, #tpu.memory_space<vmem>>) attributes {dimension_semantics = [#tpu.dimension_semantics<parallel>], iteration_bounds = array<i64: 2>, scalar_prefetch = 0 : i64, scratch_operands = 0 : i64, tpu.core_type = #tpu.core_type<tc>, window_params = [{transform_indices = @transform_0, window_bounds = array<i64: 128, 128>}, {pipeline_mode = #tpu.pipeline_mode<synchronous>, transform_indices = @transform_1, window_bounds = array<i64: 128, 128>}, {transform_indices = @transform_2, window_bounds = array<i64: 128, 128>}]} {
    %c0 = arith.constant 0 : index
    %c0_0 = arith.constant 0 : index
    %0 = vector.load %arg1[%c0, %c0_0] : memref<128x128xbf16, #tpu.memory_space<vmem>>, vector<128x128xbf16>
    %c0_1 = arith.constant 0 : index
    %c0_2 = arith.constant 0 : index
    %1 = vector.load %arg2[%c0_1, %c0_2] : memref<128x128xbf16, #tpu.memory_space<vmem>>, vector<128x128xbf16>
    %cst = arith.constant dense<0.000000e+00> : vector<128x128xf32>
    %2 = tpu.matmul %0, %1, %cst {dimension_numbers = #tpu.dot_dimension_numbers<[1], [0], [0], [1], [0, 0, 1, 1], [], []>} : vector<128x128xbf16>, vector<128x128xbf16>, vector<128x128xf32> -> vector<128x128xf32>
    %3 = arith.truncf %2 : vector<128x128xf32> to vector<128x128xbf16>
    %c0_3 = arith.constant 0 : index
    %c0_4 = arith.constant 0 : index
    %4 = vector.load %arg3[%c0_3, %c0_4] : memref<128x128xbf16, #tpu.memory_space<vmem>>, vector<128x128xbf16>
    tpu.vector_store %arg3[%c0_3, %c0_4], %3 {strides = array<i32>} : memref<128x128xbf16, #tpu.memory_space<vmem>>, vector<128x128xbf16>,
    return
  }
  func.func @transform_0(%arg0: i32) -> (i32, i32) {
    %c0_i32 = arith.constant 0 : i32
    %c0_i32_0 = arith.constant 0 : i32
    return %arg0, %c0_i32 : i32, i32
  }
  func.func @transform_1(%arg0: i32) -> (i32, i32) {
    %c0_i32 = arith.constant 0 : i32
    %c0_i32_0 = arith.constant 0 : i32
    %c0_i32_1 = arith.constant 0 : i32
    return %c0_i32, %c0_i32_0 : i32, i32
  }
  func.func @transform_2(%arg0: i32) -> (i32, i32) {
    %c0_i32 = arith.constant 0 : i32
    %c0_i32_0 = arith.constant 0 : i32
    return %arg0, %c0_i32 : i32, i32
  }
}

module attributes {stable_mosaic.version = 11 : i64} {
  func.func @_aggregate_prelu_pair_kernel(%arg0: i32, %arg1: i32, %arg2: memref<64x128xbf16, #tpu.memory_space<vmem>>, %arg3: memref<128x128xbf16, #tpu.memory_space<vmem>>, %arg4: memref<128x128xbf16, #tpu.memory_space<vmem>>, %arg5: memref<1x128xf32, #tpu.memory_space<vmem>>, %arg6: memref<1xf32, #tpu.memory_space<smem>>, %arg7: memref<64x128xf32, #tpu.memory_space<vmem>>, %arg8: memref<64x128xf32, #tpu.memory_space<vmem>>) attributes {dimension_semantics = [#tpu.dimension_semantics<parallel>, #tpu.dimension_semantics<arbitrary>], iteration_bounds = array<i64: 1, 1>, scalar_prefetch = 0 : i64, scratch_operands = 0 : i64, tpu.core_type = #tpu.core_type<tc>, window_params = [{transform_indices = @transform_0, window_bounds = array<i64: 64, 128>}, {transform_indices = @transform_1, window_bounds = array<i64: 128, 128>}, {transform_indices = @transform_2, window_bounds = array<i64: 128, 128>}, {pipeline_mode = #tpu.pipeline_mode<synchronous>, transform_indices = @transform_3, window_bounds = array<i64: 1, 128>}, {transform_indices = @transform_4, window_bounds = array<i64: 1>}, {transform_indices = @transform_5, window_bounds = array<i64: 64, 128>}, {transform_indices = @transform_6, window_bounds = array<i64: 64, 128>}]} {
    %c0_i32 = arith.constant 0 : i32
    %0 = arith.cmpi eq, %arg1, %c0_i32 : i32
    %1 = arith.extui %0 : i1 to i32
    %c0_i32_0 = arith.constant 0 : i32
    %2 = arith.cmpi ne, %1, %c0_i32_0 : i32
    scf.if %2 {
      %cst_17 = arith.constant 0.000000e+00 : f32
      %17 = vector.broadcast %cst_17 : f32 to vector<64x128xf32>
      %c0_18 = arith.constant 0 : index
      %c0_19 = arith.constant 0 : index
      %18 = vector.load %arg7[%c0_18, %c0_19] : memref<64x128xf32, #tpu.memory_space<vmem>>, vector<64x128xf32>
      tpu.vector_store %arg7[%c0_18, %c0_19], %17 {strides = array<i32>} : memref<64x128xf32, #tpu.memory_space<vmem>>, vector<64x128xf32>,
      %cst_20 = arith.constant 0.000000e+00 : f32
      %19 = vector.broadcast %cst_20 : f32 to vector<64x128xf32>
      %c0_21 = arith.constant 0 : index
      %c0_22 = arith.constant 0 : index
      %20 = vector.load %arg8[%c0_21, %c0_22] : memref<64x128xf32, #tpu.memory_space<vmem>>, vector<64x128xf32>
      tpu.vector_store %arg8[%c0_21, %c0_22], %19 {strides = array<i32>} : memref<64x128xf32, #tpu.memory_space<vmem>>, vector<64x128xf32>,
    } else {
    }
    %c0 = arith.constant 0 : index
    %c0_1 = arith.constant 0 : index
    %3 = vector.load %arg2[%c0, %c0_1] : memref<64x128xbf16, #tpu.memory_space<vmem>>, vector<64x128xbf16>
    %c0_2 = arith.constant 0 : index
    %c0_3 = arith.constant 0 : index
    %4 = vector.load %arg7[%c0_2, %c0_3] : memref<64x128xf32, #tpu.memory_space<vmem>>, vector<64x128xf32>
    %c0_4 = arith.constant 0 : index
    %c0_5 = arith.constant 0 : index
    %5 = vector.load %arg3[%c0_4, %c0_5] : memref<128x128xbf16, #tpu.memory_space<vmem>>, vector<128x128xbf16>
    %cst = arith.constant dense<0.000000e+00> : vector<64x128xf32>
    %6 = tpu.matmul %3, %5, %cst {dimension_numbers = #tpu.dot_dimension_numbers<[1], [0], [0], [1], [0, 0, 1, 1], [], []>} : vector<64x128xbf16>, vector<128x128xbf16>, vector<64x128xf32> -> vector<64x128xf32>
    %7 = arith.addf %4, %6 : vector<64x128xf32>
    %c0_6 = arith.constant 0 : index
    %c0_7 = arith.constant 0 : index
    %8 = vector.load %arg7[%c0_6, %c0_7] : memref<64x128xf32, #tpu.memory_space<vmem>>, vector<64x128xf32>
    tpu.vector_store %arg7[%c0_6, %c0_7], %7 {strides = array<i32>} : memref<64x128xf32, #tpu.memory_space<vmem>>, vector<64x128xf32>,
    %c0_8 = arith.constant 0 : index
    %c0_9 = arith.constant 0 : index
    %9 = vector.load %arg8[%c0_8, %c0_9] : memref<64x128xf32, #tpu.memory_space<vmem>>, vector<64x128xf32>
    %c0_10 = arith.constant 0 : index
    %c0_11 = arith.constant 0 : index
    %10 = vector.load %arg4[%c0_10, %c0_11] : memref<128x128xbf16, #tpu.memory_space<vmem>>, vector<128x128xbf16>
    %cst_12 = arith.constant dense<0.000000e+00> : vector<64x128xf32>
    %11 = tpu.matmul %3, %10, %cst_12 {dimension_numbers = #tpu.dot_dimension_numbers<[1], [0], [0], [1], [0, 0, 1, 1], [], []>} : vector<64x128xbf16>, vector<128x128xbf16>, vector<64x128xf32> -> vector<64x128xf32>
    %12 = arith.addf %9, %11 : vector<64x128xf32>
    %c0_13 = arith.constant 0 : index
    %c0_14 = arith.constant 0 : index
    %13 = vector.load %arg8[%c0_13, %c0_14] : memref<64x128xf32, #tpu.memory_space<vmem>>, vector<64x128xf32>
    tpu.vector_store %arg8[%c0_13, %c0_14], %12 {strides = array<i32>} : memref<64x128xf32, #tpu.memory_space<vmem>>, vector<64x128xf32>,
    %c0_i32_15 = arith.constant 0 : i32
    %14 = arith.cmpi eq, %arg1, %c0_i32_15 : i32
    %15 = arith.extui %14 : i1 to i32
    %c0_i32_16 = arith.constant 0 : i32
    %16 = arith.cmpi ne, %15, %c0_i32_16 : i32
    scf.if %16 {
      %c0_17 = arith.constant 0 : index
      %17 = memref.load %arg6[%c0_17] : memref<1xf32, #tpu.memory_space<smem>>
      %c0_18 = arith.constant 0 : index
      %c0_19 = arith.constant 0 : index
      %18 = vector.load %arg7[%c0_18, %c0_19] : memref<64x128xf32, #tpu.memory_space<vmem>>, vector<64x128xf32>
      %c0_20 = arith.constant 0 : index
      %c0_21 = arith.constant 0 : index
      %19 = vector.load %arg5[%c0_20, %c0_21] : memref<1x128xf32, #tpu.memory_space<vmem>>, vector<1x128xf32>
      %20 = vector.broadcast %19 : vector<1x128xf32> to vector<64x128xf32>
      %21 = arith.addf %18, %20 : vector<64x128xf32>
      %c0_22 = arith.constant 0 : index
      %c0_23 = arith.constant 0 : index
      %22 = vector.load %arg8[%c0_22, %c0_23] : memref<64x128xf32, #tpu.memory_space<vmem>>, vector<64x128xf32>
      %c0_24 = arith.constant 0 : index
      %c0_25 = arith.constant 0 : index
      %23 = vector.load %arg5[%c0_24, %c0_25] : memref<1x128xf32, #tpu.memory_space<vmem>>, vector<1x128xf32>
      %24 = vector.broadcast %23 : vector<1x128xf32> to vector<64x128xf32>
      %25 = arith.addf %22, %24 : vector<64x128xf32>
      %cst_26 = arith.constant 0.000000e+00 : f32
      %26 = vector.broadcast %cst_26 : f32 to vector<64x128xf32>
      %27 = arith.cmpf oge, %21, %26 : vector<64x128xf32>
      %28 = vector.broadcast %17 : f32 to vector<64x128xf32>
      %29 = arith.mulf %28, %21 : vector<64x128xf32>
      %30 = arith.select %27, %21, %29 : vector<64x128xi1>, vector<64x128xf32>
      %c0_27 = arith.constant 0 : index
      %c0_28 = arith.constant 0 : index
      %31 = vector.load %arg7[%c0_27, %c0_28] : memref<64x128xf32, #tpu.memory_space<vmem>>, vector<64x128xf32>
      tpu.vector_store %arg7[%c0_27, %c0_28], %30 {strides = array<i32>} : memref<64x128xf32, #tpu.memory_space<vmem>>, vector<64x128xf32>,
      %cst_29 = arith.constant 0.000000e+00 : f32
      %32 = vector.broadcast %cst_29 : f32 to vector<64x128xf32>
      %33 = arith.cmpf oge, %25, %32 : vector<64x128xf32>
      %34 = vector.broadcast %17 : f32 to vector<64x128xf32>
      %35 = arith.mulf %34, %25 : vector<64x128xf32>
      %36 = arith.select %33, %25, %35 : vector<64x128xi1>, vector<64x128xf32>
      %c0_30 = arith.constant 0 : index
      %c0_31 = arith.constant 0 : index
      %37 = vector.load %arg8[%c0_30, %c0_31] : memref<64x128xf32, #tpu.memory_space<vmem>>, vector<64x128xf32>
      tpu.vector_store %arg8[%c0_30, %c0_31], %36 {strides = array<i32>} : memref<64x128xf32, #tpu.memory_space<vmem>>, vector<64x128xf32>,
    } else {
    }
    return
  }
  func.func @transform_0(%arg0: i32, %arg1: i32) -> (i32, i32) {
    %c0_i32 = arith.constant 0 : i32
    return %arg0, %arg1 : i32, i32
  }
  func.func @transform_1(%arg0: i32, %arg1: i32) -> (i32, i32) {
    %c0_i32 = arith.constant 0 : i32
    %c0_i32_0 = arith.constant 0 : i32
    return %arg1, %c0_i32 : i32, i32
  }
  func.func @transform_2(%arg0: i32, %arg1: i32) -> (i32, i32) {
    %c1_i32 = arith.constant 1 : i32
    %0 = arith.addi %arg1, %c1_i32 : i32
    %c0_i32 = arith.constant 0 : i32
    %c0_i32_0 = arith.constant 0 : i32
    return %0, %c0_i32 : i32, i32
  }
  func.func @transform_3(%arg0: i32, %arg1: i32) -> (i32, i32) {
    %c0_i32 = arith.constant 0 : i32
    %c0_i32_0 = arith.constant 0 : i32
    %c0_i32_1 = arith.constant 0 : i32
    return %c0_i32, %c0_i32_0 : i32, i32
  }
  func.func @transform_4(%arg0: i32, %arg1: i32) -> i32 {
    %c0_i32 = arith.constant 0 : i32
    %c0_i32_0 = arith.constant 0 : i32
    return %c0_i32 : i32
  }
  func.func @transform_5(%arg0: i32, %arg1: i32) -> (i32, i32) {
    %c0_i32 = arith.constant 0 : i32
    %c0_i32_0 = arith.constant 0 : i32
    return %arg0, %c0_i32 : i32, i32
  }
  func.func @transform_6(%arg0: i32, %arg1: i32) -> (i32, i32) {
    %c0_i32 = arith.constant 0 : i32
    %c0_i32_0 = arith.constant 0 : i32
    return %arg0, %c0_i32 : i32, i32
  }
}

module attributes {stable_mosaic.version = 11 : i64} {
  func.func @_dgi_disc_kernel(%arg0: i32, %arg1: memref<8x128xf32, #tpu.memory_space<vmem>>, %arg2: memref<8x128xf32, #tpu.memory_space<vmem>>, %arg3: memref<128x128xf32, #tpu.memory_space<vmem>>, %arg4: memref<128x128xf32, #tpu.memory_space<vmem>>, %arg5: memref<2x1xf32, #tpu.memory_space<vmem>>, %arg6: memref<2x8xf32, #tpu.memory_space<vmem>>, %arg7: memref<2x8xf32, #tpu.memory_space<vmem>>) attributes {dimension_semantics = [#tpu.dimension_semantics<arbitrary>], iteration_bounds = array<i64: 1>, scalar_prefetch = 0 : i64, scratch_operands = 0 : i64, tpu.core_type = #tpu.core_type<tc>, window_params = [{pipeline_mode = #tpu.pipeline_mode<synchronous>, transform_indices = @transform_0, window_bounds = array<i64: 8, 128>}, {pipeline_mode = #tpu.pipeline_mode<synchronous>, transform_indices = @transform_1, window_bounds = array<i64: 8, 128>}, {pipeline_mode = #tpu.pipeline_mode<synchronous>, transform_indices = @transform_2, window_bounds = array<i64: 128, 128>}, {pipeline_mode = #tpu.pipeline_mode<synchronous>, transform_indices = @transform_3, window_bounds = array<i64: 128, 128>}, {pipeline_mode = #tpu.pipeline_mode<synchronous>, transform_indices = @transform_4, window_bounds = array<i64: 2, 1>}, {pipeline_mode = #tpu.pipeline_mode<synchronous>, transform_indices = @transform_5, window_bounds = array<i64: 2, 8>}, {pipeline_mode = #tpu.pipeline_mode<synchronous>, transform_indices = @transform_6, window_bounds = array<i64: 2, 8>}]} {
    %c0 = arith.constant 0 : index
    %c0_0 = arith.constant 0 : index
    %0 = vector.load %arg1[%c0, %c0_0] : memref<8x128xf32, #tpu.memory_space<vmem>>, vector<8x128xf32>
    %c0_1 = arith.constant 0 : index
    %c0_2 = arith.constant 0 : index
    %1 = vector.load %arg2[%c0_1, %c0_2] : memref<8x128xf32, #tpu.memory_space<vmem>>, vector<8x128xf32>
    %cst = arith.constant dense<0.000000e+00> : vector<128xf32>
    %2 = vector.multi_reduction <add>, %0, %cst [0] : vector<8x128xf32> to vector<128xf32>
    %3 = vector.shape_cast %2 : vector<128xf32> to vector<1x128xf32>
    %cst_3 = arith.constant 8.000000e+00 : f32
    %4 = vector.broadcast %cst_3 : f32 to vector<1x128xf32>
    %5 = arith.divf %3, %4 : vector<1x128xf32>
    %6 = arith.negf %5 : vector<1x128xf32>
    %7 = math.exp %6 : vector<1x128xf32>
    %cst_4 = arith.constant 1.000000e+00 : f32
    %8 = vector.broadcast %cst_4 : f32 to vector<1x128xf32>
    %9 = arith.addf %8, %7 : vector<1x128xf32>
    %10 = arith.divf %8, %9 : vector<1x128xf32>
    %c0_5 = arith.constant 0 : index
    %c0_6 = arith.constant 0 : index
    %11 = vector.load %arg3[%c0_5, %c0_6] : memref<128x128xf32, #tpu.memory_space<vmem>>, vector<128x128xf32>
    %cst_7 = arith.constant dense<0.000000e+00> : vector<1x128xf32>
    %12 = tpu.matmul %10, %11, %cst_7 {dimension_numbers = #tpu.dot_dimension_numbers<[1], [0], [0], [1], [0, 0, 1, 1], [], []>} : vector<1x128xf32>, vector<128x128xf32>, vector<1x128xf32> -> vector<1x128xf32>
    %c0_8 = arith.constant 0 : index
    %c0_9 = arith.constant 0 : index
    %13 = vector.load %arg4[%c0_8, %c0_9] : memref<128x128xf32, #tpu.memory_space<vmem>>, vector<128x128xf32>
    %cst_10 = arith.constant dense<0.000000e+00> : vector<1x128xf32>
    %14 = tpu.matmul %10, %13, %cst_10 {dimension_numbers = #tpu.dot_dimension_numbers<[1], [0], [0], [1], [0, 0, 1, 1], [], []>} : vector<1x128xf32>, vector<128x128xf32>, vector<1x128xf32> -> vector<1x128xf32>
    %15 = tpu.concatenate %12, %14 in 0 : vector<1x128xf32>, vector<1x128xf32> -> vector<2x128xf32>
    %16 = arith.truncf %15 : vector<2x128xf32> to vector<2x128xbf16>
    %c0_11 = arith.constant 0 : index
    %c0_12 = arith.constant 0 : index
    %17 = vector.load %arg5[%c0_11, %c0_12] : memref<2x1xf32, #tpu.memory_space<vmem>>, vector<2x1xf32>
    %18 = arith.truncf %0 : vector<8x128xf32> to vector<8x128xbf16>
    %cst_13 = arith.constant dense<0.000000e+00> : vector<2x8xf32>
    %19 = tpu.matmul %16, %18, %cst_13 {dimension_numbers = #tpu.dot_dimension_numbers<[1], [1], [0], [0], [0, 0, 1, 0], [], []>} : vector<2x128xbf16>, vector<8x128xbf16>, vector<2x8xf32> -> vector<2x8xf32>
    %20 = vector.broadcast %17 : vector<2x1xf32> to vector<2x8xf32>
    %21 = arith.addf %19, %20 : vector<2x8xf32>
    %c0_14 = arith.constant 0 : index
    %c0_15 = arith.constant 0 : index
    %22 = vector.load %arg6[%c0_14, %c0_15] : memref<2x8xf32, #tpu.memory_space<vmem>>, vector<2x8xf32>
    tpu.vector_store %arg6[%c0_14, %c0_15], %21 {strides = array<i32>} : memref<2x8xf32, #tpu.memory_space<vmem>>, vector<2x8xf32>,
    %23 = arith.truncf %1 : vector<8x128xf32> to vector<8x128xbf16>
    %cst_16 = arith.constant dense<0.000000e+00> : vector<2x8xf32>
    %24 = tpu.matmul %16, %23, %cst_16 {dimension_numbers = #tpu.dot_dimension_numbers<[1], [1], [0], [0], [0, 0, 1, 0], [], []>} : vector<2x128xbf16>, vector<8x128xbf16>, vector<2x8xf32> -> vector<2x8xf32>
    %25 = vector.broadcast %17 : vector<2x1xf32> to vector<2x8xf32>
    %26 = arith.addf %24, %25 : vector<2x8xf32>
    %c0_17 = arith.constant 0 : index
    %c0_18 = arith.constant 0 : index
    %27 = vector.load %arg7[%c0_17, %c0_18] : memref<2x8xf32, #tpu.memory_space<vmem>>, vector<2x8xf32>
    tpu.vector_store %arg7[%c0_17, %c0_18], %26 {strides = array<i32>} : memref<2x8xf32, #tpu.memory_space<vmem>>, vector<2x8xf32>,
    return
  }
  func.func @transform_0(%arg0: i32) -> (i32, i32) {
    %c0_i32 = arith.constant 0 : i32
    %c0_i32_0 = arith.constant 0 : i32
    %c0_i32_1 = arith.constant 0 : i32
    return %c0_i32, %c0_i32_0 : i32, i32
  }
  func.func @transform_1(%arg0: i32) -> (i32, i32) {
    %c0_i32 = arith.constant 0 : i32
    %c0_i32_0 = arith.constant 0 : i32
    %c0_i32_1 = arith.constant 0 : i32
    return %c0_i32, %c0_i32_0 : i32, i32
  }
  func.func @transform_2(%arg0: i32) -> (i32, i32) {
    %c0_i32 = arith.constant 0 : i32
    %c0_i32_0 = arith.constant 0 : i32
    %c0_i32_1 = arith.constant 0 : i32
    return %c0_i32, %c0_i32_0 : i32, i32
  }
  func.func @transform_3(%arg0: i32) -> (i32, i32) {
    %c0_i32 = arith.constant 0 : i32
    %c0_i32_0 = arith.constant 0 : i32
    %c0_i32_1 = arith.constant 0 : i32
    return %c0_i32, %c0_i32_0 : i32, i32
  }
  func.func @transform_4(%arg0: i32) -> (i32, i32) {
    %c0_i32 = arith.constant 0 : i32
    %c0_i32_0 = arith.constant 0 : i32
    %c0_i32_1 = arith.constant 0 : i32
    return %c0_i32, %c0_i32_0 : i32, i32
  }
  func.func @transform_5(%arg0: i32) -> (i32, i32) {
    %c0_i32 = arith.constant 0 : i32
    %c0_i32_0 = arith.constant 0 : i32
    %c0_i32_1 = arith.constant 0 : i32
    return %c0_i32, %c0_i32_0 : i32, i32
  }
  func.func @transform_6(%arg0: i32) -> (i32, i32) {
    %c0_i32 = arith.constant 0 : i32
    %c0_i32_0 = arith.constant 0 : i32
    %c0_i32_1 = arith.constant 0 : i32
    return %c0_i32, %c0_i32_0 : i32, i32
  }
}

module attributes {stable_mosaic.version = 11 : i64} {
  func.func @_dgi_disc_kernel(%arg0: i32, %arg1: memref<16x128xf32, #tpu.memory_space<vmem>>, %arg2: memref<16x128xf32, #tpu.memory_space<vmem>>, %arg3: memref<128x128xf32, #tpu.memory_space<vmem>>, %arg4: memref<128x128xf32, #tpu.memory_space<vmem>>, %arg5: memref<2x1xf32, #tpu.memory_space<vmem>>, %arg6: memref<2x16xf32, #tpu.memory_space<vmem>>, %arg7: memref<2x16xf32, #tpu.memory_space<vmem>>) attributes {dimension_semantics = [#tpu.dimension_semantics<arbitrary>], iteration_bounds = array<i64: 1>, scalar_prefetch = 0 : i64, scratch_operands = 0 : i64, tpu.core_type = #tpu.core_type<tc>, window_params = [{pipeline_mode = #tpu.pipeline_mode<synchronous>, transform_indices = @transform_0, window_bounds = array<i64: 16, 128>}, {pipeline_mode = #tpu.pipeline_mode<synchronous>, transform_indices = @transform_1, window_bounds = array<i64: 16, 128>}, {pipeline_mode = #tpu.pipeline_mode<synchronous>, transform_indices = @transform_2, window_bounds = array<i64: 128, 128>}, {pipeline_mode = #tpu.pipeline_mode<synchronous>, transform_indices = @transform_3, window_bounds = array<i64: 128, 128>}, {pipeline_mode = #tpu.pipeline_mode<synchronous>, transform_indices = @transform_4, window_bounds = array<i64: 2, 1>}, {pipeline_mode = #tpu.pipeline_mode<synchronous>, transform_indices = @transform_5, window_bounds = array<i64: 2, 16>}, {pipeline_mode = #tpu.pipeline_mode<synchronous>, transform_indices = @transform_6, window_bounds = array<i64: 2, 16>}]} {
    %c0 = arith.constant 0 : index
    %c0_0 = arith.constant 0 : index
    %0 = vector.load %arg1[%c0, %c0_0] : memref<16x128xf32, #tpu.memory_space<vmem>>, vector<16x128xf32>
    %c0_1 = arith.constant 0 : index
    %c0_2 = arith.constant 0 : index
    %1 = vector.load %arg2[%c0_1, %c0_2] : memref<16x128xf32, #tpu.memory_space<vmem>>, vector<16x128xf32>
    %cst = arith.constant dense<0.000000e+00> : vector<128xf32>
    %2 = vector.multi_reduction <add>, %0, %cst [0] : vector<16x128xf32> to vector<128xf32>
    %3 = vector.shape_cast %2 : vector<128xf32> to vector<1x128xf32>
    %cst_3 = arith.constant 1.600000e+01 : f32
    %4 = vector.broadcast %cst_3 : f32 to vector<1x128xf32>
    %5 = arith.divf %3, %4 : vector<1x128xf32>
    %6 = arith.negf %5 : vector<1x128xf32>
    %7 = math.exp %6 : vector<1x128xf32>
    %cst_4 = arith.constant 1.000000e+00 : f32
    %8 = vector.broadcast %cst_4 : f32 to vector<1x128xf32>
    %9 = arith.addf %8, %7 : vector<1x128xf32>
    %10 = arith.divf %8, %9 : vector<1x128xf32>
    %c0_5 = arith.constant 0 : index
    %c0_6 = arith.constant 0 : index
    %11 = vector.load %arg3[%c0_5, %c0_6] : memref<128x128xf32, #tpu.memory_space<vmem>>, vector<128x128xf32>
    %cst_7 = arith.constant dense<0.000000e+00> : vector<1x128xf32>
    %12 = tpu.matmul %10, %11, %cst_7 {dimension_numbers = #tpu.dot_dimension_numbers<[1], [0], [0], [1], [0, 0, 1, 1], [], []>} : vector<1x128xf32>, vector<128x128xf32>, vector<1x128xf32> -> vector<1x128xf32>
    %c0_8 = arith.constant 0 : index
    %c0_9 = arith.constant 0 : index
    %13 = vector.load %arg4[%c0_8, %c0_9] : memref<128x128xf32, #tpu.memory_space<vmem>>, vector<128x128xf32>
    %cst_10 = arith.constant dense<0.000000e+00> : vector<1x128xf32>
    %14 = tpu.matmul %10, %13, %cst_10 {dimension_numbers = #tpu.dot_dimension_numbers<[1], [0], [0], [1], [0, 0, 1, 1], [], []>} : vector<1x128xf32>, vector<128x128xf32>, vector<1x128xf32> -> vector<1x128xf32>
    %15 = tpu.concatenate %12, %14 in 0 : vector<1x128xf32>, vector<1x128xf32> -> vector<2x128xf32>
    %16 = arith.truncf %15 : vector<2x128xf32> to vector<2x128xbf16>
    %c0_11 = arith.constant 0 : index
    %c0_12 = arith.constant 0 : index
    %17 = vector.load %arg5[%c0_11, %c0_12] : memref<2x1xf32, #tpu.memory_space<vmem>>, vector<2x1xf32>
    %18 = arith.truncf %0 : vector<16x128xf32> to vector<16x128xbf16>
    %cst_13 = arith.constant dense<0.000000e+00> : vector<2x16xf32>
    %19 = tpu.matmul %16, %18, %cst_13 {dimension_numbers = #tpu.dot_dimension_numbers<[1], [1], [0], [0], [0, 0, 1, 0], [], []>} : vector<2x128xbf16>, vector<16x128xbf16>, vector<2x16xf32> -> vector<2x16xf32>
    %20 = vector.broadcast %17 : vector<2x1xf32> to vector<2x16xf32>
    %21 = arith.addf %19, %20 : vector<2x16xf32>
    %c0_14 = arith.constant 0 : index
    %c0_15 = arith.constant 0 : index
    %22 = vector.load %arg6[%c0_14, %c0_15] : memref<2x16xf32, #tpu.memory_space<vmem>>, vector<2x16xf32>
    tpu.vector_store %arg6[%c0_14, %c0_15], %21 {strides = array<i32>} : memref<2x16xf32, #tpu.memory_space<vmem>>, vector<2x16xf32>,
    %23 = arith.truncf %1 : vector<16x128xf32> to vector<16x128xbf16>
    %cst_16 = arith.constant dense<0.000000e+00> : vector<2x16xf32>
    %24 = tpu.matmul %16, %23, %cst_16 {dimension_numbers = #tpu.dot_dimension_numbers<[1], [1], [0], [0], [0, 0, 1, 0], [], []>} : vector<2x128xbf16>, vector<16x128xbf16>, vector<2x16xf32> -> vector<2x16xf32>
    %25 = vector.broadcast %17 : vector<2x1xf32> to vector<2x16xf32>
    %26 = arith.addf %24, %25 : vector<2x16xf32>
    %c0_17 = arith.constant 0 : index
    %c0_18 = arith.constant 0 : index
    %27 = vector.load %arg7[%c0_17, %c0_18] : memref<2x16xf32, #tpu.memory_space<vmem>>, vector<2x16xf32>
    tpu.vector_store %arg7[%c0_17, %c0_18], %26 {strides = array<i32>} : memref<2x16xf32, #tpu.memory_space<vmem>>, vector<2x16xf32>,
    return
  }
  func.func @transform_0(%arg0: i32) -> (i32, i32) {
    %c0_i32 = arith.constant 0 : i32
    %c0_i32_0 = arith.constant 0 : i32
    %c0_i32_1 = arith.constant 0 : i32
    return %c0_i32, %c0_i32_0 : i32, i32
  }
  func.func @transform_1(%arg0: i32) -> (i32, i32) {
    %c0_i32 = arith.constant 0 : i32
    %c0_i32_0 = arith.constant 0 : i32
    %c0_i32_1 = arith.constant 0 : i32
    return %c0_i32, %c0_i32_0 : i32, i32
  }
  func.func @transform_2(%arg0: i32) -> (i32, i32) {
    %c0_i32 = arith.constant 0 : i32
    %c0_i32_0 = arith.constant 0 : i32
    %c0_i32_1 = arith.constant 0 : i32
    return %c0_i32, %c0_i32_0 : i32, i32
  }
  func.func @transform_3(%arg0: i32) -> (i32, i32) {
    %c0_i32 = arith.constant 0 : i32
    %c0_i32_0 = arith.constant 0 : i32
    %c0_i32_1 = arith.constant 0 : i32
    return %c0_i32, %c0_i32_0 : i32, i32
  }
  func.func @transform_4(%arg0: i32) -> (i32, i32) {
    %c0_i32 = arith.constant 0 : i32
    %c0_i32_0 = arith.constant 0 : i32
    %c0_i32_1 = arith.constant 0 : i32
    return %c0_i32, %c0_i32_0 : i32, i32
  }
  func.func @transform_5(%arg0: i32) -> (i32, i32) {
    %c0_i32 = arith.constant 0 : i32
    %c0_i32_0 = arith.constant 0 : i32
    %c0_i32_1 = arith.constant 0 : i32
    return %c0_i32, %c0_i32_0 : i32, i32
  }
  func.func @transform_6(%arg0: i32) -> (i32, i32) {
    %c0_i32 = arith.constant 0 : i32
    %c0_i32_0 = arith.constant 0 : i32
    %c0_i32_1 = arith.constant 0 : i32
    return %c0_i32, %c0_i32_0 : i32, i32
  }
}

</mosaic_0001>

<bundles_post_ra>
// kernel: dgi_forward.4
= control target key start
LH: loop header
LB: loop body
LE: loop exit
PB: predicated region body
PF: predicated region fallthrough
CT: control target
= control target key end

     0   :  { %s726_s9 = smov 0   ;;  %s784_s0 = inlined_call_operand.vmem [shape: bf16[256,128], index: 0, kind: input, shape index: {}]   ;;  %s785_s1 = inlined_call_operand.vmem [shape: bf16[128,128], index: 1, kind: input, shape index: {}]   ;;  %s786_s2 = inlined_call_operand.vmem [shape: bf16[256,128], index: 2, kind: output, shape index: {}]  }
   0x1 LB: > { %s509_s10 = sadd.s32 4294967295, %s709_s9   ;;  %p513_p0 = scmp.ge.s32.totalorder %s709_s9, 1  ;;  %s709_s9 = sphi %s726_s9, %s12_s9  }
   0x2   : > { %p113_p1 = scmp.lt.s32.totalorder %s709_s9, 3 }
   0x4   : > { %p114_p2 = pnand %p513_p0, %p113_p1 }
   0x5   : > { %v687_v0 = vld [vmem:[%s785_s1] sm:$0xff] (!%p114_p2)   ;;  %s514_s13 = sshll.u32 (!%p114_p2), %s509_s10, 4  ;;  %v688_v1 = vld [vmem:[%s785_s1 + $0x8] sm:$0xff] (!%p114_p2)   ;;  %v689_v2 = vld [vmem:[%s785_s1 + $0x10] sm:$0xff] (!%p114_p2)  }
   0x6   : > { %117 = sbr.rel (%p114_p2) target bundleno = 264 (0x108), region = 28  ;;  %p136_p3 = scmp.lt.s32.totalorder (!%p114_p2), %s514_s13, 31  ;;  %631 = vmatprep.subr.bf16.mxu0 (!%p114_p2), %v687_v0  ;;  %663 = vmatprep.subr.bf16.mxu1 (!%p114_p2), %v687_v0  ;;  %v690_v3 = vld [vmem:[%s785_s1 + $0x18] sm:$0xff] (!%p114_p2)   ;;  %v691_v6 = vld [vmem:[%s785_s1 + $0x20] sm:$0xff] (!%p114_p2)   ;;  %v692_v7 = vld [vmem:[%s785_s1 + $0x28] sm:$0xff] (!%p114_p2)  }
   0x7   : > { %632 = vmatpush3.bf16.msra.mxu0 (!%p114_p2), %v687_v0  ;;  %671 = vmatpush3.bf16.msra.mxu1 (!%p114_p2), %v687_v0  ;;  %v693_v8 = vld [vmem:[%s785_s1 + $0x30] sm:$0xff] (!%p114_p2)   ;;  %v694_v9 = vld [vmem:[%s785_s1 + $0x38] sm:$0xff] (!%p114_p2)  }
   0x8   : > { %633 = vmatprep.subr.bf16.mxu0 (!%p114_p2), %v688_v1  ;;  %664 = vmatprep.subr.bf16.mxu1 (!%p114_p2), %v688_v1 }
   0xb   : > { %634 = vmatpush3.bf16.msra.mxu0 (!%p114_p2), %v688_v1  ;;  %672 = vmatpush3.bf16.msra.mxu1 (!%p114_p2), %v688_v1 }
   0xc   : > { %635 = vmatprep.subr.bf16.mxu0 (!%p114_p2), %v689_v2  ;;  %665 = vmatprep.subr.bf16.mxu1 (!%p114_p2), %v689_v2 }
   0xd   : > { %s788_s13 = smov (!%p136_p3, %s514_s13), 31 }
   0xe   : > { %s515_s18 = sshll.u32 %s788_s13, 2 }
   0xf   : > { %s751_s21 = scalar_lea.vmem %s784_s0, %s515_s18  ;;  %636 = vmatpush3.bf16.msra.mxu0 %v689_v2  ;;  %673 = vmatpush3.bf16.msra.mxu1 %v689_v2  ;;  %s145_s6 = scalar_lea.vmem %s786_s2, %s515_s18 }
  0x10   : > { %v695_v4 = vld [vmem:[%s751_s21] sm:$0xff]   ;;  %637 = vmatprep.subr.bf16.mxu0 %v690_v3  ;;  %666 = vmatprep.subr.bf16.mxu1 %v690_v3  ;;  %v697_v10 = vld [vmem:[%s751_s21 + $0x8] sm:$0xff]   ;;  %v699_v12 = vld [vmem:[%s751_s21 + $0x10] sm:$0xff]  }
  0x11   : > { %v696_v5 = vld [vmem:[%s751_s21 + $0x20] sm:$0xff]   ;;  %647 = vmatprep.mubr.bf16.mxu0 %v695_v4  ;;  %v698_v11 = vld [vmem:[%s751_s21 + $0x28] sm:$0xff]   ;;  %v700_v13 = vld [vmem:[%s751_s21 + $0x30] sm:$0xff]  }
  0x12   : > { %655 = vmatprep.mubr.bf16.mxu1 %v696_v5  ;;  %v701_v14 = vld [vmem:[%s751_s21 + $0x18] sm:$0xff]  }
  0x13   : > { %638 = vmatpush3.bf16.msra.mxu0 %v690_v3  ;;  %674 = vmatpush3.bf16.msra.mxu1 %v690_v3  ;;  %v702_v15 = vld [vmem:[%s751_s21 + $0x38] sm:$0xff]  }
  0x14   : > { %639 = vmatprep.subr.bf16.mxu0 %v691_v6  ;;  %667 = vmatprep.subr.bf16.mxu1 %v691_v6 }
  0x17   : > { %640 = vmatpush3.bf16.msra.mxu0 %v691_v6  ;;  %675 = vmatpush3.bf16.msra.mxu1 %v691_v6 }
  0x18   : > { %641 = vmatprep.subr.bf16.mxu0 %v692_v7  ;;  %668 = vmatprep.subr.bf16.mxu1 %v692_v7 }
  0x1b   : > { %642 = vmatpush3.bf16.msra.mxu0 %v692_v7  ;;  %676 = vmatpush3.bf16.msra.mxu1 %v692_v7 }
  0x1c   : > { %643 = vmatprep.subr.bf16.mxu0 %v693_v8  ;;  %669 = vmatprep.subr.bf16.mxu1 %v693_v8 }
  0x1f   : > { %644 = vmatpush3.bf16.msra.mxu0 %v693_v8  ;;  %677 = vmatpush3.bf16.msra.mxu1 %v693_v8 }
  0x20   : > { %645 = vmatprep.subr.bf16.mxu0 %v694_v9  ;;  %670 = vmatprep.subr.bf16.mxu1 %v694_v9 }
  0x23   : > { %646 = vmatpush3.bf16.msra.mxu0 %v694_v9  ;;  %678 = vmatpush3.bf16.msra.mxu1 %v694_v9 }
  0x26   : > { %648 = vmatmul.mubr.bf16.vlgmr.msra.gmra.mrb[0].mxu0 %v697_v10  ;;  %656 = vmatmul.mubr.bf16.vlgmr.msra.gmra.mrb[0].mxu1 %v698_v11 }
  0x27   : > { %651 = vmatprep.mubr.bf16.mxu0 %v699_v12  ;;  %659 = vmatprep.mubr.bf16.mxu1 %v700_v13 }
  0x2e   : > { %652 = vmatmul.mubr.bf16.gmra.mrb[4].mxu0 %v701_v14  ;;  %660 = vmatmul.mubr.bf16.gmra.mrb[4].mxu1 %v702_v15 }
  0xf9   : > { %v649_v16 = vpop.f32.mrb[0].mxu0  ;;  %v657_v17 = vpop.f32.mrb[0].mxu1 }
  0xfa   : > { %v310_v18 = vpop.f32.mrb[1].mxu0  ;;  %v342_v19 = vpop.f32.mrb[1].mxu1 }
  0xfb   : > { %v650_v20 = vpop.f32.mrb[2].mxu0  ;;  %v658_v21 = vpop.f32.mrb[2].mxu1 }
  0xfc   : > { %v576_v22 = vpack.c.bf16 %v650_v20, %v649_v16  ;;  %v596_v23 = vpack.c.bf16 %v658_v21, %v657_v17  ;;  %v313_v24 = vpop.f32.mrb[3].mxu0  ;;  %v345_v25 = vpop.f32.mrb[3].mxu1 }
  0xfd   : > { %v571_v26 = vpack.c.bf16 %v313_v24, %v310_v18  ;;  %v591_v27 = vpack.c.bf16 %v345_v25, %v342_v19 }
  0xfe   : > { %608 = vst [vmem:[%s145_s6 + $0x8] sm:$0xff] %v576_v22   ;;  %612 = vst [vmem:[%s145_s6 + $0x28] sm:$0xff] %v596_v23  }
  0xff   : > { %572 = vst [vmem:[%s145_s6] sm:$0xff] %v571_v26   ;;  %611 = vst [vmem:[%s145_s6 + $0x20] sm:$0xff] %v591_v27  }
 0x101   : > { %v653_v28 = vpop.f32.mrb[4].mxu0  ;;  %v661_v29 = vpop.f32.mrb[4].mxu1 }
 0x102   : > { %v326_v30 = vpop.f32.mrb[5].mxu0  ;;  %v358_v31 = vpop.f32.mrb[5].mxu1 }
 0x103   : > { %v654_v32 = vpop.f32.mrb[6].mxu0  ;;  %v662_v33 = vpop.f32.mrb[6].mxu1 }
 0x104   : > { %v586_v34 = vpack.c.bf16 %v654_v32, %v653_v28  ;;  %v606_v35 = vpack.c.bf16 %v662_v33, %v661_v29  ;;  %v329_v36 = vpop.f32.mrb[7].mxu0  ;;  %v361_v37 = vpop.f32.mrb[7].mxu1 }
 0x105   : > { %v581_v38 = vpack.c.bf16 %v329_v36, %v326_v30  ;;  %v601_v39 = vpack.c.bf16 %v361_v37, %v358_v31 }
 0x106   : > { %610 = vst [vmem:[%s145_s6 + $0x18] sm:$0xff] %v586_v34   ;;  %614 = vst [vmem:[%s145_s6 + $0x38] sm:$0xff] %v606_v35  }
 0x107   : > { %609 = vst [vmem:[%s145_s6 + $0x10] sm:$0xff] %v581_v38   ;;  %613 = vst [vmem:[%s145_s6 + $0x30] sm:$0xff] %v601_v39  }
 0x108 PF: > { %s12_s9 = sadd.s32 1, %s709_s9  }
 0x109   : > { %p9_p4 = scmp.ge.s32.totalorder %s12_s9, 4  }
 0x10b   :  { %11 = sbr.rel (!%p9_p4) target bundleno = 1 (0x1), region = 58 }

// kernel: dgi_forward.5
= control target key start
LH: loop header
LB: loop body
LE: loop exit
PB: predicated region body
PF: predicated region fallthrough
CT: control target
= control target key end

     0   :  { %s841_s1 = inlined_call_operand.vmem [shape: bf16[256,128], index: 1, kind: input, shape index: {}, may-alias: {1,2}]   ;;  %s842_s2 = inlined_call_operand.vmem [shape: bf16[256,128], index: 2, kind: input, shape index: {}, may-alias: {1,2}]   ;;  %s843_s0 = inlined_call_operand.vmem [shape: bf16[64,128], index: 0, kind: input, shape index: {}]   ;;  %s844_s3 = inlined_call_operand.vmem [shape: f32[1,128], index: 3, kind: input, shape index: {}]   ;;  %s845_s4 = inlined_call_operand.<no memory space> [shape: f32[1], index: 4, kind: input, shape index: {}]   ;;  %s846_s5 = inlined_call_operand.vmem [shape: f32[64,128], index: 5, kind: output, shape index: {0}]   ;;  %s847_s6 = inlined_call_operand.vmem [shape: f32[64,128], index: 6, kind: output, shape index: {1}]  }
   0x1   :  { %v636_v0 = vld [vmem:[%s841_s1] sm:$0xff]   ;;  %v638_v2 = vld [vmem:[%s841_s1 + $0x8] sm:$0xff]   ;;  %v640_v4 = vld [vmem:[%s841_s1 + $0x10] sm:$0xff]   ;;  %v759_v24 = vstv %s845_s4 }
   0x2   :  { %v637_v1 = vld [vmem:[%s842_s2 + $0x40] sm:$0xff]   ;;  %587 = vmatprep.subr.bf16.mxu0 %v636_v0  ;;  %v639_v3 = vld [vmem:[%s842_s2 + $0x48] sm:$0xff]   ;;  %v641_v5 = vld [vmem:[%s842_s2 + $0x50] sm:$0xff]  }
   0x3   :  { %611 = vmatprep.subr.bf16.mxu1 %v637_v1  ;;  %588 = vmatpush3.bf16.msra.mxu0 %v636_v0  ;;  %v642_v6 = vld [vmem:[%s841_s1 + $0x18] sm:$0xff]   ;;  %v644_v8 = vld [vmem:[%s841_s1 + $0x20] sm:$0xff]   ;;  %v646_v10 = vld [vmem:[%s841_s1 + $0x28] sm:$0xff]  }
   0x4   :  { %612 = vmatpush3.bf16.msra.mxu1 %v637_v1  ;;  %589 = vmatprep.subr.bf16.mxu0 %v638_v2  ;;  %v643_v7 = vld [vmem:[%s842_s2 + $0x58] sm:$0xff]   ;;  %v645_v9 = vld [vmem:[%s842_s2 + $0x60] sm:$0xff]   ;;  %v647_v12 = vld [vmem:[%s842_s2 + $0x68] sm:$0xff]  }
   0x5   :  { %613 = vmatprep.subr.bf16.mxu1 %v639_v3  ;;  %v652_v11 = vld [vmem:[%s843_s0] sm:$0xff]   ;;  %v648_v13 = vld [vmem:[%s841_s1 + $0x30] sm:$0xff]   ;;  %v650_v15 = vld [vmem:[%s841_s1 + $0x38] sm:$0xff]  }
   0x6   :  { %603 = vmatprep.mubr.bf16.mxu0 %v652_v11  ;;  %627 = vmatprep.mubr.bf16.mxu1 %v652_v11  ;;  %v649_v14 = vld [vmem:[%s842_s2 + $0x70] sm:$0xff]   ;;  %v651_v16 = vld [vmem:[%s842_s2 + $0x78] sm:$0xff]   ;;  %v653_v17 = vld [vmem:[%s843_s0 + $0x8] sm:$0xff]  }
   0x7   :  { %590 = vmatpush3.bf16.msra.mxu0 %v638_v2  ;;  %v654_v18 = vld [vmem:[%s843_s0 + $0x10] sm:$0xff]   ;;  %v655_v19 = vld [vmem:[%s843_s0 + $0x18] sm:$0xff]   ;;  %v754_v21 = vld [vmem:[%s844_s3] ss:$0 sm:$0xff] }
   0x8   :  { %614 = vmatpush3.bf16.msra.mxu1 %v639_v3  ;;  %591 = vmatprep.subr.bf16.mxu0 %v640_v4 }
   0x9   :  { %615 = vmatprep.subr.bf16.mxu1 %v641_v5 }
   0xb   :  { %592 = vmatpush3.bf16.msra.mxu0 %v640_v4 }
   0xc   :  { %616 = vmatpush3.bf16.msra.mxu1 %v641_v5  ;;  %593 = vmatprep.subr.bf16.mxu0 %v642_v6 }
   0xd   :  { %617 = vmatprep.subr.bf16.mxu1 %v643_v7 }
   0xf   :  { %594 = vmatpush3.bf16.msra.mxu0 %v642_v6 }
  0x10   :  { %618 = vmatpush3.bf16.msra.mxu1 %v643_v7  ;;  %595 = vmatprep.subr.bf16.mxu0 %v644_v8 }
  0x11   :  { %619 = vmatprep.subr.bf16.mxu1 %v645_v9 }
  0x13   :  { %596 = vmatpush3.bf16.msra.mxu0 %v644_v8 }
  0x14   :  { %620 = vmatpush3.bf16.msra.mxu1 %v645_v9  ;;  %597 = vmatprep.subr.bf16.mxu0 %v646_v10 }
  0x15   :  { %621 = vmatprep.subr.bf16.mxu1 %v647_v12 }
  0x17   :  { %598 = vmatpush3.bf16.msra.mxu0 %v646_v10 }
  0x18   :  { %622 = vmatpush3.bf16.msra.mxu1 %v647_v12  ;;  %599 = vmatprep.subr.bf16.mxu0 %v648_v13 }
  0x19   :  { %623 = vmatprep.subr.bf16.mxu1 %v649_v14 }
  0x1b   :  { %600 = vmatpush3.bf16.msra.mxu0 %v648_v13 }
  0x1c   :  { %624 = vmatpush3.bf16.msra.mxu1 %v649_v14  ;;  %601 = vmatprep.subr.bf16.mxu0 %v650_v15 }
  0x1d   :  { %625 = vmatprep.subr.bf16.mxu1 %v651_v16 }
  0x1f   :  { %602 = vmatpush3.bf16.msra.mxu0 %v650_v15 }
  0x20   :  { %626 = vmatpush3.bf16.msra.mxu1 %v651_v16 }
  0x22   :  { %604 = vmatmul.mubr.bf16.vlgmr.msra.gmra.mrb[0].mxu0 %v653_v17 }
  0x23   :  { %628 = vmatmul.mubr.bf16.vlgmr.msra.gmra.mrb[0].mxu1 %v653_v17  ;;  %607 = vmatprep.mubr.bf16.mxu0 %v654_v18 }
  0x24   :  { %631 = vmatprep.mubr.bf16.mxu1 %v654_v18 }
  0x2a   :  { %608 = vmatmul.mubr.bf16.gmra.mrb[4].mxu0 %v655_v19 }
  0x2b   :  { %632 = vmatmul.mubr.bf16.gmra.mrb[4].mxu1 %v655_v19 }
  0xf5   :  { %v605_v20 = vpop.f32.mrb[0].mxu0 }
  0xf6   :  { %v629_v22 = vpop.f32.mrb[0].mxu1  ;;  %v204_v23 = vpop.f32.mrb[1].mxu0  ;;  %v425_v27 = vadd.f32 %v605_v20, %v754_v21 }
  0xf7   :  { %v357_v25 = vpop.f32.mrb[1].mxu1  ;;  %v606_v26 = vpop.f32.mrb[2].mxu0  ;;  %v441_v30 = vadd.f32 %v629_v22, %v754_v21  ;;  %v423_v31 = vadd.f32 %v754_v21, %v204_v23 }
  0xf8   :  { %v630_v28 = vpop.f32.mrb[2].mxu1  ;;  %v207_v29 = vpop.f32.mrb[3].mxu0  ;;  %vm449_vm0 = vcmp.ge.f32.partialorder %v425_v27, 0.0  ;;  %v458_v33 = vmul.f32 %v759_v24, %v425_v27  ;;  %v439_v34 = vadd.f32 %v754_v21, %v357_v25  ;;  %v426_v35 = vadd.f32 %v606_v26, %v754_v21 }
  0xf9   :  { %v360_v32 = vpop.f32.mrb[3].mxu1  ;;  %vm482_vm1 = vcmp.ge.f32.partialorder %v441_v30, 0.0  ;;  %v490_v36 = vmul.f32 %v759_v24, %v441_v30  ;;  %vm447_vm2 = vcmp.ge.f32.partialorder %v423_v31, 0.0  ;;  %v456_v37 = vmul.f32 %v759_v24, %v423_v31 }
  0xfa   :  { %v466_v38 = vsel %vm449_vm0, %v425_v27, %v458_v33  ;;  %vm480_vm3 = vcmp.ge.f32.partialorder %v439_v34, 0.0  ;;  %v488_v39 = vmul.f32 %v759_v24, %v439_v34  ;;  %vm450_vm4 = vcmp.ge.f32.partialorder %v426_v35, 0.0 }
  0xfb   :  { %474 = vst [vmem:[%s846_s5 + $0x10] sm:$0xff] %v466_v38  ;;  %v498_v40 = vsel %vm482_vm1, %v441_v30, %v490_v36  ;;  %v464_v41 = vsel %vm447_vm2, %v423_v31, %v456_v37  ;;  %v459_v42 = vmul.f32 %v759_v24, %v426_v35  ;;  %v442_v43 = vadd.f32 %v630_v28, %v754_v21 }
  0xfc   :  { %506 = vst [vmem:[%s847_s6 + $0x10] sm:$0xff] %v498_v40  ;;  %472 = vst [vmem:[%s846_s5] sm:$0xff] %v464_v41  ;;  %v496_v45 = vsel %vm480_vm3, %v439_v34, %v488_v39  ;;  %v424_v46 = vadd.f32 %v754_v21, %v207_v29  ;;  %v440_v54 = vadd.f32 %v754_v21, %v360_v32 }
  0xfd   :  { %v609_v44 = vpop.f32.mrb[4].mxu0  ;;  %504 = vst [vmem:[%s847_s6] sm:$0xff] %v496_v45  ;;  %v467_v49 = vsel %vm450_vm4, %v426_v35, %v459_v42  ;;  %vm483_vm5 = vcmp.ge.f32.partialorder %v442_v43, 0.0  ;;  %v491_v50 = vmul.f32 %v759_v24, %v442_v43 }
  0xfe   :  { %v633_v47 = vpop.f32.mrb[4].mxu1  ;;  %v220_v48 = vpop.f32.mrb[5].mxu0  ;;  %475 = vst [vmem:[%s846_s5 + $0x18] sm:$0xff] %v467_v49  ;;  %vm448_vm6 = vcmp.ge.f32.partialorder %v424_v46, 0.0  ;;  %v457_v53 = vmul.f32 %v759_v24, %v424_v46  ;;  %v429_v55 = vadd.f32 %v609_v44, %v754_v21  ;;  %vm481_vm7 = vcmp.ge.f32.partialorder %v440_v54, 0.0 }
  0xff   :  { %v373_v51 = vpop.f32.mrb[5].mxu1  ;;  %v610_v52 = vpop.f32.mrb[6].mxu0  ;;  %v499_v58 = vsel %vm483_vm5, %v442_v43, %v491_v50  ;;  %v445_v59 = vadd.f32 %v633_v47, %v754_v21  ;;  %v489_v62 = vmul.f32 %v759_v24, %v440_v54  ;;  %v427_v1 = vadd.f32 %v754_v21, %v220_v48 }
 0x100   :  { %v634_v56 = vpop.f32.mrb[6].mxu1  ;;  %v223_v57 = vpop.f32.mrb[7].mxu0  ;;  %507 = vst [vmem:[%s847_s6 + $0x18] sm:$0xff] %v499_v58  ;;  %v465_v61 = vsel %vm448_vm6, %v424_v46, %v457_v53  ;;  %vm453_vm8 = vcmp.ge.f32.partialorder %v429_v55, 0.0  ;;  %v462_v63 = vmul.f32 %v759_v24, %v429_v55  ;;  %v443_v3 = vadd.f32 %v754_v21, %v373_v51 }
 0x101   :  { %v376_v60 = vpop.f32.mrb[7].mxu1  ;;  %473 = vst [vmem:[%s846_s5 + $0x8] sm:$0xff] %v465_v61  ;;  %vm486_vm9 = vcmp.ge.f32.partialorder %v445_v59, 0.0  ;;  %v494_v0 = vmul.f32 %v759_v24, %v445_v59  ;;  %v497_v2 = vsel %vm481_vm7, %v440_v54, %v489_v62  ;;  %vm451_vm10 = vcmp.ge.f32.partialorder %v427_v1, 0.0 }
 0x102   :  { %505 = vst [vmem:[%s847_s6 + $0x8] sm:$0xff] %v497_v2  ;;  %v470_v4 = vsel %vm453_vm8, %v429_v55, %v462_v63  ;;  %v460_v6 = vmul.f32 %v759_v24, %v427_v1  ;;  %vm484_vm11 = vcmp.ge.f32.partialorder %v443_v3, 0.0  ;;  %v492_v7 = vmul.f32 %v759_v24, %v443_v3 }
 0x103   :  { %v502_v5 = vsel %vm486_vm9, %v445_v59, %v494_v0  ;;  %478 = vst [vmem:[%s846_s5 + $0x30] sm:$0xff] %v470_v4  ;;  %v430_v8 = vadd.f32 %v610_v52, %v754_v21  ;;  %v446_v9 = vadd.f32 %v634_v56, %v754_v21  ;;  %v428_v14 = vadd.f32 %v754_v21, %v223_v57 }
 0x104   :  { %510 = vst [vmem:[%s847_s6 + $0x30] sm:$0xff] %v502_v5  ;;  %v468_v10 = vsel %vm451_vm10, %v427_v1, %v460_v6  ;;  %v500_v11 = vsel %vm484_vm11, %v443_v3, %v492_v7  ;;  %v444_v15 = vadd.f32 %v754_v21, %v376_v60 }
 0x105   :  { %476 = vst [vmem:[%s846_s5 + $0x20] sm:$0xff] %v468_v10  ;;  %vm454_vm12 = vcmp.ge.f32.partialorder %v430_v8, 0.0  ;;  %v463_v12 = vmul.f32 %v759_v24, %v430_v8  ;;  %vm487_vm13 = vcmp.ge.f32.partialorder %v446_v9, 0.0  ;;  %508 = vst [vmem:[%s847_s6 + $0x20] sm:$0xff] %v500_v11  ;;  %v495_v13 = vmul.f32 %v759_v24, %v446_v9 }
 0x106   :  { %vm452_vm14 = vcmp.ge.f32.partialorder %v428_v14, 0.0  ;;  %v461_v18 = vmul.f32 %v759_v24, %v428_v14  ;;  %vm485_vm15 = vcmp.ge.f32.partialorder %v444_v15, 0.0  ;;  %v493_v19 = vmul.f32 %v759_v24, %v444_v15 }
 0x107   :  { %v471_v16 = vsel %vm454_vm12, %v430_v8, %v463_v12  ;;  %v503_v17 = vsel %vm487_vm13, %v446_v9, %v495_v13 }
 0x108   :  { %479 = vst [vmem:[%s846_s5 + $0x38] sm:$0xff] %v471_v16  ;;  %511 = vst [vmem:[%s847_s6 + $0x38] sm:$0xff] %v503_v17  ;;  %v469_v20 = vsel %vm452_vm14, %v428_v14, %v461_v18  ;;  %v501_v21 = vsel %vm485_vm15, %v444_v15, %v493_v19 }
 0x109   :  { %477 = vst [vmem:[%s846_s5 + $0x28] sm:$0xff] %v469_v20  ;;  %509 = vst [vmem:[%s847_s6 + $0x28] sm:$0xff] %v501_v21 }

// kernel: dgi_forward.7
= control target key start
LH: loop header
LB: loop body
LE: loop exit
PB: predicated region body
PF: predicated region fallthrough
CT: control target
= control target key end

     0   :  { %v494_v0 = vmov 0.0|0.0   ;;  %vm495_vm0 = vmmov 0   ;;  %v496_v8 = vmov 0.0   ;;  %vm214_vm1 = vcmask 1040384   ;;  %s676_s3 = inlined_call_operand.vmem [shape: f32[128,128], index: 3, kind: input, shape index: {}]   ;;  %s677_s2 = inlined_call_operand.vmem [shape: f32[128,128], index: 2, kind: input, shape index: {}]   ;;  %s678_s0 = inlined_call_operand.vmem [shape: f32[8,128], index: 0, kind: input, shape index: {}]   ;;  %s679_s1 = inlined_call_operand.vmem [shape: f32[8,128], index: 1, kind: input, shape index: {}]   ;;  %s680_s4 = inlined_call_operand.vmem [shape: f32[2,1], index: 4, kind: input, shape index: {}]   ;;  %s681_s5 = inlined_call_operand.vmem [shape: f32[2,8], index: 5, kind: output, shape index: {0}]   ;;  %s682_s6 = inlined_call_operand.vmem [shape: f32[2,8], index: 6, kind: output, shape index: {1}]  }
   0x1   :  { %461 = vmatprep.subr.bf16.mxu1 %v494_v0  ;;  %437 = vmatprep.subr.bf16.mxu0 %v494_v0  ;;  %v125_v1 = vld [vmem:[%s676_s3] sm:$0xff]  ;;  %v126_v2 = vld [vmem:[%s676_s3 + $0x8] sm:$0xff]  ;;  %v127_v6 = vld [vmem:[%s676_s3 + $0x10] sm:$0xff]  ;;  %vm264_vm2 = vcmask 58368  }
   0x2   :  { %v39_v3 = vld [vmem:[%s677_s2] sm:$0xff]  ;;  %v462_v4 = vpack.c.bf16 %v126_v2, %v125_v1  ;;  %v40_v5 = vld [vmem:[%s677_s2 + $0x8] sm:$0xff]  ;;  %v128_v7 = vld [vmem:[%s676_s3 + $0x18] sm:$0xff]  ;;  %422 = vmatprep.mubr.msk.f32.mxu1 %vm495_vm0, %v496_v8  ;;  %387 = vmatprep.mubr.msk.f32.mxu0 %vm495_vm0, %v496_v8 }
   0x3   :  { %v438_v9 = vpack.c.bf16 %v40_v5, %v39_v3  ;;  %v41_v10 = vld [vmem:[%s677_s2 + $0x10] sm:$0xff]  ;;  %v42_v11 = vld [vmem:[%s677_s2 + $0x18] sm:$0xff]  ;;  %v465_v12 = vpack.c.bf16 %v128_v7, %v127_v6  ;;  %v129_v14 = vld [vmem:[%s676_s3 + $0x20] sm:$0xff] }
   0x4   :  { %463 = vmatpush3.bf16.msra.mxu1 %v462_v4  ;;  %v441_v13 = vpack.c.bf16 %v42_v11, %v41_v10  ;;  %v130_v15 = vld [vmem:[%s676_s3 + $0x28] sm:$0xff]  ;;  %v43_v16 = vld [vmem:[%s677_s2 + $0x20] sm:$0xff]  ;;  %v131_v20 = vld [vmem:[%s676_s3 + $0x30] sm:$0xff] }
   0x5   :  { %439 = vmatpush3.bf16.msra.mxu0 %v438_v9  ;;  %464 = vmatprep.subr.bf16.mxu1 %v494_v0  ;;  %v44_v17 = vld [vmem:[%s677_s2 + $0x28] sm:$0xff]  ;;  %v468_v18 = vpack.c.bf16 %v130_v15, %v129_v14  ;;  %v132_v21 = vld [vmem:[%s676_s3 + $0x38] sm:$0xff]  ;;  %v45_v22 = vld [vmem:[%s677_s2 + $0x30] sm:$0xff] }
   0x6   :  { %440 = vmatprep.subr.bf16.mxu0 %v494_v0  ;;  %v444_v19 = vpack.c.bf16 %v44_v17, %v43_v16  ;;  %v46_v23 = vld [vmem:[%s677_s2 + $0x38] sm:$0xff]  ;;  %v594_v24 = vld [vmem:[%s678_s0] sm:$0xff]  ;;  %v471_v25 = vpack.c.bf16 %v132_v21, %v131_v20  ;;  %v134_v29 = vld [vmem:[%s676_s3 + $0x48] sm:$0xff] }
   0x7   :  { %v25_v26 = vrot.slane %v594_v24, 4  ;;  %v447_v27 = vpack.c.bf16 %v46_v23, %v45_v22  ;;  %v133_v28 = vld [vmem:[%s676_s3 + $0x40] sm:$0xff]  ;;  %v48_v31 = vld [vmem:[%s677_s2 + $0x48] sm:$0xff]  ;;  %v135_v36 = vld [vmem:[%s676_s3 + $0x50] sm:$0xff]  ;;  %v218_v62 = vpack.c.bf16 %v594_v24, %v594_v24 }
   0x8   :  { %466 = vmatpush3.bf16.msra.mxu1 %v465_v12  ;;  %v47_v30 = vld [vmem:[%s677_s2 + $0x40] sm:$0xff]  ;;  %v474_v33 = vpack.c.bf16 %v134_v29, %v133_v28  ;;  %v136_v37 = vld [vmem:[%s676_s3 + $0x58] sm:$0xff]  ;;  %v49_v38 = vld [vmem:[%s677_s2 + $0x50] sm:$0xff] }
   0x9   :  { %442 = vmatpush3.bf16.msra.mxu0 %v441_v13  ;;  %467 = vmatprep.subr.bf16.mxu1 %v494_v0  ;;  %v26_v32 = vadd.f32 %v25_v26, %v594_v24  ;;  %v450_v35 = vpack.c.bf16 %v48_v31, %v47_v30  ;;  %v50_v39 = vld [vmem:[%s677_s2 + $0x58] sm:$0xff]  ;;  %v477_v41 = vpack.c.bf16 %v136_v37, %v135_v36  ;;  %v137_v44 = vld [vmem:[%s676_s3 + $0x60] sm:$0xff]  ;;  %v138_v45 = vld [vmem:[%s676_s3 + $0x68] sm:$0xff] }
   0xa   :  { %443 = vmatprep.subr.bf16.mxu0 %v494_v0  ;;  %v453_v43 = vpack.c.bf16 %v50_v39, %v49_v38  ;;  %v51_v46 = vld [vmem:[%s677_s2 + $0x60] sm:$0xff]  ;;  %v52_v47 = vld [vmem:[%s677_s2 + $0x68] sm:$0xff]  ;;  %v480_v49 = vpack.c.bf16 %v138_v45, %v137_v44  ;;  %v139_v52 = vld [vmem:[%s676_s3 + $0x70] sm:$0xff] }
   0xb   :  { %v27_v34 = vrot.slane %v26_v32, 2  ;;  %v456_v51 = vpack.c.bf16 %v52_v47, %v51_v46  ;;  %v140_v53 = vld [vmem:[%s676_s3 + $0x78] sm:$0xff]  ;;  %v53_v54 = vld [vmem:[%s677_s2 + $0x70] sm:$0xff]  ;;  %v24_v61 = vld [vmem:[%s679_s1] sm:$0xff] }
   0xc   :  { %469 = vmatpush3.bf16.msra.mxu1 %v468_v18  ;;  %v54_v55 = vld [vmem:[%s677_s2 + $0x78] sm:$0xff]  ;;  %v483_v57 = vpack.c.bf16 %v140_v53, %v139_v52  ;;  %v266_v63 = vpack.c.bf16 %v24_v61, %v24_v61  ;;  %v217_v2 = vld [vmem:[%s680_s4] sm:$0x3] }
   0xd   :  { %445 = vmatpush3.bf16.msra.mxu0 %v444_v19  ;;  %470 = vmatprep.subr.bf16.mxu1 %v494_v0  ;;  %v28_v40 = vadd.f32 %v27_v34, %v26_v32  ;;  %v459_v58 = vpack.c.bf16 %v54_v55, %v53_v54 }
   0xe   :  { %446 = vmatprep.subr.bf16.mxu0 %v494_v0 }
   0xf   :  { %v29_v42 = vrot.slane %v28_v40, 1 }
  0x10   :  { %472 = vmatpush3.bf16.msra.mxu1 %v471_v25 }
  0x11   :  { %448 = vmatpush3.bf16.msra.mxu0 %v447_v27  ;;  %473 = vmatprep.subr.bf16.mxu1 %v494_v0  ;;  %v30_v48 = vadd.f32 %v29_v42, %v28_v40 }
  0x12   :  { %449 = vmatprep.subr.bf16.mxu0 %v494_v0 }
  0x13   :  { %v316_v50 = vmul.f32 -0.125, %v30_v48 }
  0x14   :  { %475 = vmatpush3.bf16.msra.mxu1 %v474_v33 }
  0x15   :  { %451 = vmatpush3.bf16.msra.mxu0 %v450_v35  ;;  %476 = vmatprep.subr.bf16.mxu1 %v494_v0  ;;  %v34_v56 = vmul.f32 1.442695, %v316_v50 }
  0x16   :  { %452 = vmatprep.subr.bf16.mxu0 %v494_v0 }
  0x17   :  { %490 = vpow2.f32 %v34_v56 }
  0x18   :  { %478 = vmatpush3.bf16.msra.mxu1 %v477_v41 }
  0x19   :  { %454 = vmatpush3.bf16.msra.mxu0 %v453_v43  ;;  %479 = vmatprep.subr.bf16.mxu1 %v494_v0 }
  0x1a   :  { %455 = vmatprep.subr.bf16.mxu0 %v494_v0 }
  0x1c   :  { %481 = vmatpush3.bf16.msra.mxu1 %v480_v49 }
  0x1d   :  { %457 = vmatpush3.bf16.msra.mxu0 %v456_v51  ;;  %482 = vmatprep.subr.bf16.mxu1 %v494_v0 }
  0x1e   :  { %458 = vmatprep.subr.bf16.mxu0 %v494_v0  ;;  %v497_v0 = vmov 0  }
  0x1f   :  { %489 = vset.pattern.permute.xlu0 %v497_v0 }
  0x20   :  { %484 = vmatpush3.bf16.msra.mxu1 %v483_v57  ;;  %221 = vperm.xlu0 %489, %v217_v2  }
  0x21   :  { %460 = vmatpush3.bf16.msra.mxu0 %v459_v58  ;;  %431 = vmatprep.subr.bf16.mxu1 %v496_v8  ;;  %v491_v59 = vpop.eup %490 }
  0x22   :  { %425 = vmatprep.subr.bf16.mxu0 %v496_v8  ;;  %v36_v60 = vadd.f32 1.0, %v491_v59 }
  0x24   :  { %492 = vrcp.f32 %v36_v60 }
  0x2e   :  { %v493_v1 = vpop.eup %492 }
  0x2f   :  { %423 = vmatmul.mubr.f32.vlgmr.msra.gmra.mrb[0].mxu1 %v493_v1  ;;  %388 = vmatmul.mubr.f32.vlgmr.msra.gmra.mrb[0].mxu0 %v493_v1 }
  0x30   :  { %426 = vmatpush3.bf16.xpose.msra.mxu0 %v218_v62  ;;  %432 = vmatpush3.bf16.xpose.msra.mxu1 %v266_v63 }
  0x31   :  { %427 = vmatprep.mubr.msk.bf16.mxu0 %vm495_vm0, %v496_v8  ;;  %433 = vmatprep.mubr.msk.bf16.mxu1 %vm495_vm0, %v496_v8 }
  0x9f   :  { %v222_v11 = vpop.permute.xlu0 %221 }
 0x102   :  { %v207_v3 = vpop.f32.mrb[0].mxu1  ;;  %v121_v4 = vpop.f32.mrb[0].mxu0 }
 0x103   :  { %v212_v5 = vrot.slane %v207_v3, 7  ;;  %v424_v6 = vpop.f32.mrb[1].mxu1  ;;  %v389_v7 = vpop.f32.mrb[1].mxu0 }
 0x105   :  { %v215_v9 = vsel %vm214_vm1, %v121_v4, %v212_v5 }
 0x106   :  { %v216_v10 = vpack.c.bf16 %v215_v9, %v215_v9 }
 0x108   :  { %428 = vmatmul.mubr.bf16.vlgmr.msra.gmra.mrb[4].mxu0 %v216_v10  ;;  %434 = vmatmul.mubr.bf16.vlgmr.msra.gmra.mrb[4].mxu1 %v216_v10 }
 0x1db   :  { %v258_v12 = vpop.f32.mrb[4].mxu0  ;;  %v301_v8 = vpop.f32.mrb[4].mxu1 }
 0x1dc   :  { %v259_v13 = vadd.f32 %v258_v12, %v222_v11  ;;  %v302_v14 = vadd.f32 %v301_v8, %v222_v11  ;;  %v429_v15 = vpop.f32.mrb[5].mxu0  ;;  %v435_v16 = vpop.f32.mrb[5].mxu1 }
 0x1dd   :  { %v261_v17 = vpop.f32.mrb[6].mxu0  ;;  %v304_v18 = vpop.f32.mrb[6].mxu1 }
 0x1de   :  { %265 = vst.msk [vmem:[%s681_s5] sm:$0x3] %vm264_vm2, %v259_v13  ;;  %307 = vst.msk [vmem:[%s682_s6] sm:$0x3] %vm264_vm2, %v302_v14  ;;  %v430_v19 = vpop.f32.mrb[7].mxu0  ;;  %v436_v20 = vpop.f32.mrb[7].mxu1 }

// kernel: dgi_forward.6
= control target key start
LH: loop header
LB: loop body
LE: loop exit
PB: predicated region body
PF: predicated region fallthrough
CT: control target
= control target key end

     0   :  { %v497_v0 = vmov 0.0|0.0   ;;  %vm498_vm0 = vmmov 0   ;;  %v499_v8 = vmov 0.0   ;;  %vm217_vm1 = vcmask 1040384   ;;  %s687_s3 = inlined_call_operand.vmem [shape: f32[128,128], index: 3, kind: input, shape index: {}]   ;;  %s688_s2 = inlined_call_operand.vmem [shape: f32[128,128], index: 2, kind: input, shape index: {}]   ;;  %s689_s0 = inlined_call_operand.vmem [shape: f32[16,128], index: 0, kind: input, shape index: {}]   ;;  %s690_s1 = inlined_call_operand.vmem [shape: f32[16,128], index: 1, kind: input, shape index: {}]   ;;  %s691_s4 = inlined_call_operand.vmem [shape: f32[2,1], index: 4, kind: input, shape index: {}]   ;;  %s692_s5 = inlined_call_operand.vmem [shape: f32[2,16], index: 5, kind: output, shape index: {0}]   ;;  %s693_s6 = inlined_call_operand.vmem [shape: f32[2,16], index: 6, kind: output, shape index: {1}]  }
   0x1   :  { %464 = vmatprep.subr.bf16.mxu1 %v497_v0  ;;  %440 = vmatprep.subr.bf16.mxu0 %v497_v0  ;;  %v128_v1 = vld [vmem:[%s687_s3] sm:$0xff]  ;;  %v129_v2 = vld [vmem:[%s687_s3 + $0x8] sm:$0xff]  ;;  %v130_v6 = vld [vmem:[%s687_s3 + $0x10] sm:$0xff]  ;;  %vm267_vm2 = vcmask 123904  }
   0x2   :  { %v42_v3 = vld [vmem:[%s688_s2] sm:$0xff]  ;;  %v465_v4 = vpack.c.bf16 %v129_v2, %v128_v1  ;;  %v43_v5 = vld [vmem:[%s688_s2 + $0x8] sm:$0xff]  ;;  %v131_v7 = vld [vmem:[%s687_s3 + $0x18] sm:$0xff]  ;;  %425 = vmatprep.mubr.msk.f32.mxu1 %vm498_vm0, %v499_v8  ;;  %390 = vmatprep.mubr.msk.f32.mxu0 %vm498_vm0, %v499_v8 }
   0x3   :  { %v441_v9 = vpack.c.bf16 %v43_v5, %v42_v3  ;;  %v44_v10 = vld [vmem:[%s688_s2 + $0x10] sm:$0xff]  ;;  %v45_v11 = vld [vmem:[%s688_s2 + $0x18] sm:$0xff]  ;;  %v468_v12 = vpack.c.bf16 %v131_v7, %v130_v6  ;;  %v132_v14 = vld [vmem:[%s687_s3 + $0x20] sm:$0xff] }
   0x4   :  { %466 = vmatpush3.bf16.msra.mxu1 %v465_v4  ;;  %v444_v13 = vpack.c.bf16 %v45_v11, %v44_v10  ;;  %v133_v15 = vld [vmem:[%s687_s3 + $0x28] sm:$0xff]  ;;  %v46_v16 = vld [vmem:[%s688_s2 + $0x20] sm:$0xff]  ;;  %v134_v20 = vld [vmem:[%s687_s3 + $0x30] sm:$0xff]  ;;  %v500_v4 = vmov 0  }
   0x5   :  { %442 = vmatpush3.bf16.msra.mxu0 %v441_v9  ;;  %467 = vmatprep.subr.bf16.mxu1 %v497_v0  ;;  %v47_v17 = vld [vmem:[%s688_s2 + $0x28] sm:$0xff]  ;;  %v471_v18 = vpack.c.bf16 %v133_v15, %v132_v14  ;;  %v135_v21 = vld [vmem:[%s687_s3 + $0x38] sm:$0xff]  ;;  %v48_v22 = vld [vmem:[%s688_s2 + $0x30] sm:$0xff] }
   0x6   :  { %443 = vmatprep.subr.bf16.mxu0 %v497_v0  ;;  %v447_v19 = vpack.c.bf16 %v47_v17, %v46_v16  ;;  %v49_v23 = vld [vmem:[%s688_s2 + $0x38] sm:$0xff]  ;;  %v597_v24 = vld [vmem:[%s689_s0] sm:$0xff]  ;;  %v474_v25 = vpack.c.bf16 %v135_v21, %v134_v20  ;;  %v602_v26 = vld [vmem:[%s689_s0 + $0x8] sm:$0xff]  ;;  %492 = vset.pattern.permute.xlu0 %v500_v4 }
   0x7   :  { %v450_v27 = vpack.c.bf16 %v49_v23, %v48_v22  ;;  %v136_v28 = vld [vmem:[%s687_s3 + $0x40] sm:$0xff]  ;;  %v137_v29 = vld [vmem:[%s687_s3 + $0x48] sm:$0xff]  ;;  %v27_v30 = vadd.f32 %v602_v26, %v597_v24  ;;  %v138_v36 = vld [vmem:[%s687_s3 + $0x50] sm:$0xff] }
   0x8   :  { %469 = vmatpush3.bf16.msra.mxu1 %v468_v12  ;;  %v50_v31 = vld [vmem:[%s688_s2 + $0x40] sm:$0xff]  ;;  %v51_v32 = vld [vmem:[%s688_s2 + $0x48] sm:$0xff]  ;;  %v477_v34 = vpack.c.bf16 %v137_v29, %v136_v28  ;;  %v139_v37 = vld [vmem:[%s687_s3 + $0x58] sm:$0xff] }
   0x9   :  { %445 = vmatpush3.bf16.msra.mxu0 %v444_v13  ;;  %470 = vmatprep.subr.bf16.mxu1 %v497_v0  ;;  %v28_v33 = vrot.slane %v27_v30, 4  ;;  %v453_v35 = vpack.c.bf16 %v51_v32, %v50_v31  ;;  %v52_v39 = vld [vmem:[%s688_s2 + $0x50] sm:$0xff]  ;;  %v53_v40 = vld [vmem:[%s688_s2 + $0x58] sm:$0xff]  ;;  %v480_v42 = vpack.c.bf16 %v139_v37, %v138_v36  ;;  %v140_v44 = vld [vmem:[%s687_s3 + $0x60] sm:$0xff] }
   0xa   :  { %446 = vmatprep.subr.bf16.mxu0 %v497_v0  ;;  %v456_v43 = vpack.c.bf16 %v53_v40, %v52_v39  ;;  %v141_v45 = vld [vmem:[%s687_s3 + $0x68] sm:$0xff]  ;;  %v54_v47 = vld [vmem:[%s688_s2 + $0x60] sm:$0xff]  ;;  %v142_v52 = vld [vmem:[%s687_s3 + $0x70] sm:$0xff] }
   0xb   :  { %v29_v38 = vadd.f32 %v28_v33, %v27_v30  ;;  %v55_v48 = vld [vmem:[%s688_s2 + $0x68] sm:$0xff]  ;;  %v483_v50 = vpack.c.bf16 %v141_v45, %v140_v44  ;;  %v143_v53 = vld [vmem:[%s687_s3 + $0x78] sm:$0xff]  ;;  %v56_v55 = vld [vmem:[%s688_s2 + $0x70] sm:$0xff] }
   0xc   :  { %472 = vmatpush3.bf16.msra.mxu1 %v471_v18  ;;  %v459_v51 = vpack.c.bf16 %v55_v48, %v54_v47  ;;  %v57_v56 = vld [vmem:[%s688_s2 + $0x78] sm:$0xff]  ;;  %v486_v58 = vpack.c.bf16 %v143_v53, %v142_v52  ;;  %v25_v63 = vld [vmem:[%s690_s1] sm:$0xff]  ;;  %v26_v1 = vld [vmem:[%s690_s1 + $0x8] sm:$0xff] }
   0xd   :  { %448 = vmatpush3.bf16.msra.mxu0 %v447_v19  ;;  %473 = vmatprep.subr.bf16.mxu1 %v497_v0  ;;  %v30_v41 = vrot.slane %v29_v38, 2  ;;  %v462_v59 = vpack.c.bf16 %v57_v56, %v56_v55  ;;  %v269_v2 = vpack.c.bf16 %v26_v1, %v25_v63  ;;  %v220_v5 = vld [vmem:[%s691_s4] sm:$0x3] }
   0xe   :  { %449 = vmatprep.subr.bf16.mxu0 %v497_v0  ;;  %224 = vperm.xlu0 %492, %v220_v5  }
   0xf   :  { %v31_v46 = vadd.f32 %v30_v41, %v29_v38 }
  0x10   :  { %475 = vmatpush3.bf16.msra.mxu1 %v474_v25 }
  0x11   :  { %451 = vmatpush3.bf16.msra.mxu0 %v450_v27  ;;  %476 = vmatprep.subr.bf16.mxu1 %v497_v0  ;;  %v32_v49 = vrot.slane %v31_v46, 1 }
  0x12   :  { %452 = vmatprep.subr.bf16.mxu0 %v497_v0 }
  0x13   :  { %v33_v54 = vadd.f32 %v32_v49, %v31_v46 }
  0x14   :  { %478 = vmatpush3.bf16.msra.mxu1 %v477_v34 }
  0x15   :  { %454 = vmatpush3.bf16.msra.mxu0 %v453_v35  ;;  %479 = vmatprep.subr.bf16.mxu1 %v497_v0  ;;  %v319_v57 = vmul.f32 -0.0625, %v33_v54 }
  0x16   :  { %455 = vmatprep.subr.bf16.mxu0 %v497_v0 }
  0x17   :  { %v37_v60 = vmul.f32 1.442695, %v319_v57 }
  0x18   :  { %481 = vmatpush3.bf16.msra.mxu1 %v480_v42 }
  0x19   :  { %457 = vmatpush3.bf16.msra.mxu0 %v456_v43  ;;  %482 = vmatprep.subr.bf16.mxu1 %v497_v0  ;;  %493 = vpow2.f32 %v37_v60 }
  0x1a   :  { %458 = vmatprep.subr.bf16.mxu0 %v497_v0 }
  0x1c   :  { %484 = vmatpush3.bf16.msra.mxu1 %v483_v50 }
  0x1d   :  { %460 = vmatpush3.bf16.msra.mxu0 %v459_v51  ;;  %485 = vmatprep.subr.bf16.mxu1 %v497_v0 }
  0x1e   :  { %461 = vmatprep.subr.bf16.mxu0 %v497_v0  ;;  %v221_v0 = vpack.c.bf16 %v602_v26, %v597_v24 }
  0x20   :  { %487 = vmatpush3.bf16.msra.mxu1 %v486_v58 }
  0x21   :  { %463 = vmatpush3.bf16.msra.mxu0 %v462_v59  ;;  %434 = vmatprep.subr.bf16.mxu1 %v499_v8 }
  0x22   :  { %428 = vmatprep.subr.bf16.mxu0 %v499_v8 }
  0x23   :  { %v494_v61 = vpop.eup %493 }
  0x24   :  { %v39_v62 = vadd.f32 1.0, %v494_v61 }
  0x26   :  { %495 = vrcp.f32 %v39_v62 }
  0x30   :  { %v496_v3 = vpop.eup %495 }
  0x31   :  { %426 = vmatmul.mubr.f32.vlgmr.msra.gmra.mrb[0].mxu1 %v496_v3  ;;  %391 = vmatmul.mubr.f32.vlgmr.msra.gmra.mrb[0].mxu0 %v496_v3 }
  0x32   :  { %429 = vmatpush3.bf16.xpose.msra.mxu0 %v221_v0  ;;  %435 = vmatpush3.bf16.xpose.msra.mxu1 %v269_v2 }
  0x33   :  { %430 = vmatprep.mubr.msk.bf16.mxu0 %vm498_vm0, %v499_v8  ;;  %436 = vmatprep.mubr.msk.bf16.mxu1 %vm498_vm0, %v499_v8 }
  0x8d   :  { %v225_v14 = vpop.permute.xlu0 %224 }
 0x104   :  { %v210_v6 = vpop.f32.mrb[0].mxu1  ;;  %v124_v7 = vpop.f32.mrb[0].mxu0 }
 0x105   :  { %v215_v9 = vrot.slane %v210_v6, 7  ;;  %v427_v10 = vpop.f32.mrb[1].mxu1  ;;  %v392_v11 = vpop.f32.mrb[1].mxu0 }
 0x107   :  { %v218_v12 = vsel %vm217_vm1, %v124_v7, %v215_v9 }
 0x108   :  { %v219_v13 = vpack.c.bf16 %v218_v12, %v218_v12 }
 0x10a   :  { %431 = vmatmul.mubr.bf16.vlgmr.msra.gmra.mrb[4].mxu0 %v219_v13  ;;  %437 = vmatmul.mubr.bf16.vlgmr.msra.gmra.mrb[4].mxu1 %v219_v13 }
 0x1dd   :  { %v261_v15 = vpop.f32.mrb[4].mxu0  ;;  %v304_v8 = vpop.f32.mrb[4].mxu1 }
 0x1de   :  { %v262_v16 = vadd.f32 %v261_v15, %v225_v14  ;;  %v305_v17 = vadd.f32 %v304_v8, %v225_v14  ;;  %v432_v18 = vpop.f32.mrb[5].mxu0  ;;  %v438_v19 = vpop.f32.mrb[5].mxu1 }
 0x1df   :  { %v264_v20 = vpop.f32.mrb[6].mxu0  ;;  %v307_v21 = vpop.f32.mrb[6].mxu1 }
 0x1e0   :  { %268 = vst.msk [vmem:[%s692_s5] sm:$0x3] %vm267_vm2, %v262_v16  ;;  %310 = vst.msk [vmem:[%s693_s6] sm:$0x3] %vm267_vm2, %v305_v17  ;;  %v433_v22 = vpop.f32.mrb[7].mxu0  ;;  %v439_v23 = vpop.f32.mrb[7].mxu1 }

</bundles_post_ra>
